<compile_context>
chip_gen: v7x
topology: tpu7x:2x2x1
jax: 0.10.0
libtpu: 0.0.40
codegen_flags: <defaults>
</compile_context>

<pallas_src>
import functools

import jax
import jax.numpy as jnp
import numpy as np
from jax.experimental import pallas as pl
from jax.experimental.pallas import tpu as pltpu


_VMEM_SPEC = pl.BlockSpec(memory_space=pltpu.MemorySpace.VMEM)


def _round8(n):
    return ((n + 7) // 8) * 8


def _rec_slab_layout(num_layers, hidden):
    """Row offsets into the recurrent slab (all multiples of 8 -> sublane-aligned)."""
    H = hidden
    layout = {}
    off = 0
    layout["whh0"] = off
    off += _round8(H)
    for l in range(1, num_layers):
        layout[f"wih{l}"] = off
        off += _round8(H)
        layout[f"whh{l}"] = off
        off += _round8(H)
        layout[f"b{l}"] = off
        off += 8
    layout["w_lin"] = off
    off += _round8(H)
    layout["b_lin"] = off
    off += 8
    return layout, off


# ----------------------------- fused Pallas kernel ----------------------------- #

def make_fused_lstm_kernel(num_layers, seq_len, batch, dim, hidden, layout):
    """Kernel refs: x (B, L*D), bd slab (rows, L*4H), rec slab (rows, 4H), out (B, 4H)."""
    L, B, D, H = seq_len, batch, dim, hidden
    G = 4 * H

    def cell(gates, c):
        # 'g' columns of `gates` are pre-scaled by 2 in the packed weights, so a
        # single full-vreg sigmoid gives i/f/o and tanh(g_raw) = 2*sigmoid(2*g_raw)-1.
        sig = jax.nn.sigmoid(gates)
        i_g = sig[:, 0 * H:1 * H]
        f_g = sig[:, 1 * H:2 * H]
        g_g = 2.0 * sig[:, 2 * H:3 * H] - 1.0
        o_g = sig[:, 3 * H:4 * H]
        c_new = f_g * c + i_g * g_g
        h_new = o_g * jnp.tanh(c_new)
        return h_new, c_new

    def kernel(x_ref, bd_ref, rec_ref, out_ref):
        # Hoisted layer-0 input projection: one block-diagonal matmul covers every
        # timestep; per-step access below is a 128-lane-aligned slice (free).
        x = x_ref[...]                                                   # (B, L*D)
        gx_wide = (jnp.dot(x, bd_ref[0:L * D, :],
                           preferred_element_type=jnp.float32)
                   + bd_ref[L * D:L * D + 1, :])                         # (B, L*4H)

        # Recurrent-path weights, loaded once and resident across the unrolled loop.
        whh0 = rec_ref[layout["whh0"]:layout["whh0"] + H, :]
        upper = []
        for l in range(1, num_layers):
            wih = rec_ref[layout[f"wih{l}"]:layout[f"wih{l}"] + H, :]
            whh = rec_ref[layout[f"whh{l}"]:layout[f"whh{l}"] + H, :]
            b = rec_ref[layout[f"b{l}"]:layout[f"b{l}"] + 1, :]
            upper.append((wih, whh, b))

        h = [jnp.zeros((B, H), jnp.float32) for _ in range(num_layers)]
        c = [jnp.zeros((B, H), jnp.float32) for _ in range(num_layers)]

        for t in range(L):                         # fully unrolled, wavefront layers
            gates = (gx_wide[:, t * G:(t + 1) * G]
                     + jnp.dot(h[0], whh0, preferred_element_type=jnp.float32))
            h[0], c[0] = cell(gates, c[0])
            for l in range(1, num_layers):
                wih, whh, b = upper[l - 1]
                gates = (jnp.dot(h[l - 1], wih, preferred_element_type=jnp.float32)
                         + jnp.dot(h[l], whh, preferred_element_type=jnp.float32)
                         + b)
                h[l], c[l] = cell(gates, c[l])

        # Fused linear head on the final hidden state; lane-dense padded store.
        w_lin = rec_ref[layout["w_lin"]:layout["w_lin"] + H, :]
        b_lin = rec_ref[layout["b_lin"]:layout["b_lin"] + 1, :]
        out_ref[...] = (jnp.dot(h[-1], w_lin, preferred_element_type=jnp.float32)
                        + b_lin).astype(out_ref.dtype)

    return kernel


# --------------------------------- JAX wrapper ---------------------------------- #

@functools.partial(jax.jit, static_argnames=("num_layers", "predict_len"))
def lstm_forward(x, slab_bd, slab_rec, *, num_layers, predict_len):
    """Mirrors _LSTM.forward: x (B, L, D) -> outputs (B, predict_len, D)."""
    B, L, D = x.shape
    H = slab_rec.shape[1] // 4
    layout, _ = _rec_slab_layout(num_layers, H)

    x2d = x.reshape(B, L * D).astype(jnp.float32)   # contiguous reshape: no data move

    kernel = make_fused_lstm_kernel(num_layers, L, B, D, H, layout)
    out_pad = pl.pallas_call(
        kernel,
        out_shape=jax.ShapeDtypeStruct((B, slab_rec.shape[1]), jnp.float32),
        in_specs=[_VMEM_SPEC, _VMEM_SPEC, _VMEM_SPEC],
        out_specs=_VMEM_SPEC,
    )(x2d, slab_bd, slab_rec)

    return out_pad[:, :predict_len * D].reshape(B, predict_len, D)


# --------------------------------- parameters ----------------------------------- #

def init_params(key, dimension, hidden_size, num_layers, predict_len):
    """Raw PyTorch-style parameters (uniform +/- 1/sqrt(H))."""
    H = hidden_size
    bound = 1.0 / float(H) ** 0.5
    layers = []
    for layer in range(num_layers):
        in_size = dimension if layer == 0 else H
        key, k1, k2, k3, k4 = jax.random.split(key, 5)
        w_ih = jax.random.uniform(k1, (4 * H, in_size), jnp.float32, -bound, bound)
        w_hh = jax.random.uniform(k2, (4 * H, H), jnp.float32, -bound, bound)
        b_ih = jax.random.uniform(k3, (4 * H,), jnp.float32, -bound, bound)
        b_hh = jax.random.uniform(k4, (4 * H,), jnp.float32, -bound, bound)
        layers.append((w_ih, w_hh, b_ih, b_hh))
    key, k5, k6 = jax.random.split(key, 3)
    out_features = predict_len * dimension
    w_lin = jax.random.uniform(k5, (out_features, H), jnp.float32, -bound, bound)
    b_lin = jax.random.uniform(k6, (out_features,), jnp.float32, -bound, bound)
    return layers, w_lin, b_lin


def pack_params(layers, w_lin, b_lin, seq_len, dimension):
    """Pack raw params into two lane-aligned f32 slabs (once, outside the jit).

    Slab 1 (bd):  block-diagonal layer-0 input projection (rows 0:L*D) + tiled
                  combined bias (row L*D), lane width L*4H.
    Slab 2 (rec): whh0, then per upper layer [wihT, whhT, combined bias], then the
                  padded linear head, lane width 4H.
    The tanh ('g') gate columns are pre-scaled by 2 (single-sigmoid trick).
    """
    num_layers = len(layers)
    H = layers[0][1].shape[1]
    G = 4 * H
    L, D = seq_len, dimension
    out_features = w_lin.shape[0]
    assert out_features <= G, "linear head wider than 4*H not supported"

    def to_np(a):
        return np.asarray(a, dtype=np.float32)

    def scale_g_cols(w_t):                 # w_t: (in, 4H)
        w_t = w_t.copy()
        w_t[:, 2 * H:3 * H] *= 2.0
        return w_t

    def scale_g_vec(b):                    # (4H,)
        b = b.copy()
        b[2 * H:3 * H] *= 2.0
        return b

    w_ih0, w_hh0, b_ih0, b_hh0 = layers[0]
    w0t = scale_g_cols(to_np(w_ih0).T)                       # (D, 4H)
    b0 = scale_g_vec(to_np(b_ih0) + to_np(b_hh0))            # (4H,)

    bd_rows = _round8(L * D + 1)
    slab_bd = np.zeros((bd_rows, L * G), np.float32)
    for t in range(L):
        slab_bd[t * D:(t + 1) * D, t * G:(t + 1) * G] = w0t
    slab_bd[L * D, :] = np.tile(b0, L)

    layout, rows = _rec_slab_layout(num_layers, H)
    slab_rec = np.zeros((rows, G), np.float32)
    slab_rec[layout["whh0"]:layout["whh0"] + H, :] = scale_g_cols(to_np(w_hh0).T)
    for l in range(1, num_layers):
        w_ih, w_hh, b_ih, b_hh = layers[l]
        slab_rec[layout[f"wih{l}"]:layout[f"wih{l}"] + H, :] = scale_g_cols(to_np(w_ih).T)
        slab_rec[layout[f"whh{l}"]:layout[f"whh{l}"] + H, :] = scale_g_cols(to_np(w_hh).T)
        slab_rec[layout[f"b{l}"], :] = scale_g_vec(to_np(b_ih) + to_np(b_hh))
    slab_rec[layout["w_lin"]:layout["w_lin"] + H, :out_features] = to_np(w_lin).T
    slab_rec[layout["b_lin"], :out_features] = to_np(b_lin)

    return jnp.asarray(slab_bd), jnp.asarray(slab_rec)


# ------------------------------ pure-JAX reference ------------------------------- #

def lstm_forward_ref(x, layers, w_lin, b_lin, predict_len):
    B, L, D = x.shape
    seq = jnp.transpose(x, (1, 0, 2)).astype(jnp.float32)    # (L, B, Din)
    h = None
    for (w_ih, w_hh, b_ih, b_hh) in layers:
        H = w_hh.shape[1]
        h = jnp.zeros((B, H), jnp.float32)
        c = jnp.zeros((B, H), jnp.float32)
        outs = []
        for t in range(L):
            gates = seq[t] @ w_ih.T + h @ w_hh.T + b_ih + b_hh
            i_g = jax.nn.sigmoid(gates[:, 0 * H:1 * H])
            f_g = jax.nn.sigmoid(gates[:, 1 * H:2 * H])
            g_g = jnp.tanh(gates[:, 2 * H:3 * H])
            o_g = jax.nn.sigmoid(gates[:, 3 * H:4 * H])
            c = f_g * c + i_g * g_g
            h = o_g * jnp.tanh(c)
            outs.append(h)
        seq = jnp.stack(outs, axis=0)
    out = h @ w_lin.T + b_lin
    return out.reshape(B, predict_len, D)


# ------------------------------------- main -------------------------------------- #

if __name__ == "__main__":
    # ExperimentArgs (synthetic): dimension=4, hidden_size=32, num_layers=2,
    # predict_length=3, bidirectional=0, dropout=0.0
    DIMENSION = 4
    HIDDEN = 32
    NUM_LAYERS = 2
    PREDICT_LEN = 3
    BATCH = 2
    SEQ_LEN = 8

    key = jax.random.PRNGKey(0)
    key, xkey = jax.random.split(key)
    x = jax.random.normal(xkey, (BATCH, SEQ_LEN, DIMENSION), dtype=jnp.float32)

    layers, w_lin, b_lin = init_params(key, DIMENSION, HIDDEN, NUM_LAYERS, PREDICT_LEN)
    slab_bd, slab_rec = pack_params(layers, w_lin, b_lin, SEQ_LEN, DIMENSION)

    out = lstm_forward(x, slab_bd, slab_rec,
                       num_layers=NUM_LAYERS, predict_len=PREDICT_LEN)
    out = jax.block_until_ready(out)

    assert out.shape == (BATCH, PREDICT_LEN, DIMENSION), out.shape
    assert jnp.all(jnp.isfinite(out))

    ref = lstm_forward_ref(x, layers, w_lin, b_lin, PREDICT_LEN)
    np.testing.assert_allclose(np.asarray(out), np.asarray(ref), rtol=1e-3, atol=1e-3)

    print("KERNEL_OK")
</pallas_src>

<mosaic_0001>
module attributes {stable_mosaic.version = 11 : i64} {
  func.func @kernel(%arg0: memref<2x32xf32, #tpu.memory_space<vmem>>, %arg1: memref<40x1024xf32, #tpu.memory_space<vmem>>, %arg2: memref<144x128xf32, #tpu.memory_space<vmem>>, %arg3: memref<2x128xf32, #tpu.memory_space<vmem>>) attributes {dimension_semantics = [], scalar_prefetch = 0 : i64, scratch_operands = 0 : i64, tpu.core_type = #tpu.core_type<tc>} {
    %c0 = arith.constant 0 : index
    %c0_0 = arith.constant 0 : index
    %0 = vector.load %arg0[%c0, %c0_0] : memref<2x32xf32, #tpu.memory_space<vmem>>, vector<2x32xf32>
    %c0_1 = arith.constant 0 : index
    %c0_2 = arith.constant 0 : index
    %1 = vector.load %arg1[%c0_1, %c0_2] : memref<40x1024xf32, #tpu.memory_space<vmem>>, vector<32x1024xf32>
    %cst = arith.constant dense<0.000000e+00> : vector<2x1024xf32>
    %2 = tpu.matmul %0, %1, %cst {dimension_numbers = #tpu.dot_dimension_numbers<[1], [0], [0], [1], [0, 0, 1, 1], [], []>} : vector<2x32xf32>, vector<32x1024xf32>, vector<2x1024xf32> -> vector<2x1024xf32>
    %c32 = arith.constant 32 : index
    %c0_3 = arith.constant 0 : index
    %3 = vector.load %arg1[%c32, %c0_3] : memref<40x1024xf32, #tpu.memory_space<vmem>>, vector<1x1024xf32>
    %4 = vector.broadcast %3 : vector<1x1024xf32> to vector<2x1024xf32>
    %5 = arith.addf %2, %4 : vector<2x1024xf32>
    %c0_4 = arith.constant 0 : index
    %c0_5 = arith.constant 0 : index
    %6 = vector.load %arg2[%c0_4, %c0_5] : memref<144x128xf32, #tpu.memory_space<vmem>>, vector<32x128xf32>
    %c32_6 = arith.constant 32 : index
    %c0_7 = arith.constant 0 : index
    %7 = vector.load %arg2[%c32_6, %c0_7] : memref<144x128xf32, #tpu.memory_space<vmem>>, vector<32x128xf32>
    %c64 = arith.constant 64 : index
    %c0_8 = arith.constant 0 : index
    %8 = vector.load %arg2[%c64, %c0_8] : memref<144x128xf32, #tpu.memory_space<vmem>>, vector<32x128xf32>
    %c96 = arith.constant 96 : index
    %c0_9 = arith.constant 0 : index
    %9 = vector.load %arg2[%c96, %c0_9] : memref<144x128xf32, #tpu.memory_space<vmem>>, vector<1x128xf32>
    %cst_10 = arith.constant 0.000000e+00 : f32
    %10 = vector.broadcast %cst_10 : f32 to vector<2x32xf32>
    %cst_11 = arith.constant 0.000000e+00 : f32
    %11 = vector.broadcast %cst_11 : f32 to vector<2x32xf32>
    %cst_12 = arith.constant 0.000000e+00 : f32
    %12 = vector.broadcast %cst_12 : f32 to vector<2x32xf32>
    %cst_13 = arith.constant 0.000000e+00 : f32
    %13 = vector.broadcast %cst_13 : f32 to vector<2x32xf32>
    %14 = vector.extract_strided_slice %5 {offsets = [0, 0], sizes = [2, 128], strides = [1, 1]} : vector<2x1024xf32> to vector<2x128xf32>
    %cst_14 = arith.constant dense<0.000000e+00> : vector<2x128xf32>
    %15 = tpu.matmul %10, %6, %cst_14 {dimension_numbers = #tpu.dot_dimension_numbers<[1], [0], [0], [1], [0, 0, 1, 1], [], []>} : vector<2x32xf32>, vector<32x128xf32>, vector<2x128xf32> -> vector<2x128xf32>
    %16 = arith.addf %14, %15 : vector<2x128xf32>
    %17 = arith.negf %16 : vector<2x128xf32>
    %18 = math.exp %17 : vector<2x128xf32>
    %cst_15 = arith.constant 1.000000e+00 : f32
    %19 = vector.broadcast %cst_15 : f32 to vector<2x128xf32>
    %20 = arith.addf %19, %18 : vector<2x128xf32>
    %21 = arith.divf %19, %20 : vector<2x128xf32>
    %22 = vector.extract_strided_slice %21 {offsets = [0, 0], sizes = [2, 32], strides = [1, 1]} : vector<2x128xf32> to vector<2x32xf32>
    %23 = vector.extract_strided_slice %21 {offsets = [0, 32], sizes = [2, 32], strides = [1, 1]} : vector<2x128xf32> to vector<2x32xf32>
    %24 = vector.extract_strided_slice %21 {offsets = [0, 64], sizes = [2, 32], strides = [1, 1]} : vector<2x128xf32> to vector<2x32xf32>
    %cst_16 = arith.constant 2.000000e+00 : f32
    %25 = vector.broadcast %cst_16 : f32 to vector<2x32xf32>
    %26 = arith.mulf %25, %24 : vector<2x32xf32>
    %cst_17 = arith.constant 1.000000e+00 : f32
    %27 = vector.broadcast %cst_17 : f32 to vector<2x32xf32>
    %28 = arith.subf %26, %27 : vector<2x32xf32>
    %29 = vector.extract_strided_slice %21 {offsets = [0, 96], sizes = [2, 32], strides = [1, 1]} : vector<2x128xf32> to vector<2x32xf32>
    %30 = arith.mulf %23, %12 : vector<2x32xf32>
    %31 = arith.mulf %22, %28 : vector<2x32xf32>
    %32 = arith.addf %30, %31 : vector<2x32xf32>
    %33 = math.tanh %32 : vector<2x32xf32>
    %34 = arith.mulf %29, %33 : vector<2x32xf32>
    %cst_18 = arith.constant dense<0.000000e+00> : vector<2x128xf32>
    %35 = tpu.matmul %34, %7, %cst_18 {dimension_numbers = #tpu.dot_dimension_numbers<[1], [0], [0], [1], [0, 0, 1, 1], [], []>} : vector<2x32xf32>, vector<32x128xf32>, vector<2x128xf32> -> vector<2x128xf32>
    %cst_19 = arith.constant dense<0.000000e+00> : vector<2x128xf32>
    %36 = tpu.matmul %11, %8, %cst_19 {dimension_numbers = #tpu.dot_dimension_numbers<[1], [0], [0], [1], [0, 0, 1, 1], [], []>} : vector<2x32xf32>, vector<32x128xf32>, vector<2x128xf32> -> vector<2x128xf32>
    %37 = arith.addf %35, %36 : vector<2x128xf32>
    %38 = vector.broadcast %9 : vector<1x128xf32> to vector<2x128xf32>
    %39 = arith.addf %37, %38 : vector<2x128xf32>
    %40 = arith.negf %39 : vector<2x128xf32>
    %41 = math.exp %40 : vector<2x128xf32>
    %cst_20 = arith.constant 1.000000e+00 : f32
    %42 = vector.broadcast %cst_20 : f32 to vector<2x128xf32>
    %43 = arith.addf %42, %41 : vector<2x128xf32>
    %44 = arith.divf %42, %43 : vector<2x128xf32>
    %45 = vector.extract_strided_slice %44 {offsets = [0, 0], sizes = [2, 32], strides = [1, 1]} : vector<2x128xf32> to vector<2x32xf32>
    %46 = vector.extract_strided_slice %44 {offsets = [0, 32], sizes = [2, 32], strides = [1, 1]} : vector<2x128xf32> to vector<2x32xf32>
    %47 = vector.extract_strided_slice %44 {offsets = [0, 64], sizes = [2, 32], strides = [1, 1]} : vector<2x128xf32> to vector<2x32xf32>
    %cst_21 = arith.constant 2.000000e+00 : f32
    %48 = vector.broadcast %cst_21 : f32 to vector<2x32xf32>
    %49 = arith.mulf %48, %47 : vector<2x32xf32>
    %cst_22 = arith.constant 1.000000e+00 : f32
    %50 = vector.broadcast %cst_22 : f32 to vector<2x32xf32>
    %51 = arith.subf %49, %50 : vector<2x32xf32>
    %52 = vector.extract_strided_slice %44 {offsets = [0, 96], sizes = [2, 32], strides = [1, 1]} : vector<2x128xf32> to vector<2x32xf32>
    %53 = arith.mulf %46, %13 : vector<2x32xf32>
    %54 = arith.mulf %45, %51 : vector<2x32xf32>
    %55 = arith.addf %53, %54 : vector<2x32xf32>
    %56 = math.tanh %55 : vector<2x32xf32>
    %57 = arith.mulf %52, %56 : vector<2x32xf32>
    %58 = vector.extract_strided_slice %5 {offsets = [0, 128], sizes = [2, 128], strides = [1, 1]} : vector<2x1024xf32> to vector<2x128xf32>
    %cst_23 = arith.constant dense<0.000000e+00> : vector<2x128xf32>
    %59 = tpu.matmul %34, %6, %cst_23 {dimension_numbers = #tpu.dot_dimension_numbers<[1], [0], [0], [1], [0, 0, 1, 1], [], []>} : vector<2x32xf32>, vector<32x128xf32>, vector<2x128xf32> -> vector<2x128xf32>
    %60 = arith.addf %58, %59 : vector<2x128xf32>
    %61 = arith.negf %60 : vector<2x128xf32>
    %62 = math.exp %61 : vector<2x128xf32>
    %cst_24 = arith.constant 1.000000e+00 : f32
    %63 = vector.broadcast %cst_24 : f32 to vector<2x128xf32>
    %64 = arith.addf %63, %62 : vector<2x128xf32>
    %65 = arith.divf %63, %64 : vector<2x128xf32>
    %66 = vector.extract_strided_slice %65 {offsets = [0, 0], sizes = [2, 32], strides = [1, 1]} : vector<2x128xf32> to vector<2x32xf32>
    %67 = vector.extract_strided_slice %65 {offsets = [0, 32], sizes = [2, 32], strides = [1, 1]} : vector<2x128xf32> to vector<2x32xf32>
    %68 = vector.extract_strided_slice %65 {offsets = [0, 64], sizes = [2, 32], strides = [1, 1]} : vector<2x128xf32> to vector<2x32xf32>
    %cst_25 = arith.constant 2.000000e+00 : f32
    %69 = vector.broadcast %cst_25 : f32 to vector<2x32xf32>
    %70 = arith.mulf %69, %68 : vector<2x32xf32>
    %cst_26 = arith.constant 1.000000e+00 : f32
    %71 = vector.broadcast %cst_26 : f32 to vector<2x32xf32>
    %72 = arith.subf %70, %71 : vector<2x32xf32>
    %73 = vector.extract_strided_slice %65 {offsets = [0, 96], sizes = [2, 32], strides = [1, 1]} : vector<2x128xf32> to vector<2x32xf32>
    %74 = arith.mulf %67, %32 : vector<2x32xf32>
    %75 = arith.mulf %66, %72 : vector<2x32xf32>
    %76 = arith.addf %74, %75 : vector<2x32xf32>
    %77 = math.tanh %76 : vector<2x32xf32>
    %78 = arith.mulf %73, %77 : vector<2x32xf32>
    %cst_27 = arith.constant dense<0.000000e+00> : vector<2x128xf32>
    %79 = tpu.matmul %78, %7, %cst_27 {dimension_numbers = #tpu.dot_dimension_numbers<[1], [0], [0], [1], [0, 0, 1, 1], [], []>} : vector<2x32xf32>, vector<32x128xf32>, vector<2x128xf32> -> vector<2x128xf32>
    %cst_28 = arith.constant dense<0.000000e+00> : vector<2x128xf32>
    %80 = tpu.matmul %57, %8, %cst_28 {dimension_numbers = #tpu.dot_dimension_numbers<[1], [0], [0], [1], [0, 0, 1, 1], [], []>} : vector<2x32xf32>, vector<32x128xf32>, vector<2x128xf32> -> vector<2x128xf32>
    %81 = arith.addf %79, %80 : vector<2x128xf32>
    %82 = vector.broadcast %9 : vector<1x128xf32> to vector<2x128xf32>
    %83 = arith.addf %81, %82 : vector<2x128xf32>
    %84 = arith.negf %83 : vector<2x128xf32>
    %85 = math.exp %84 : vector<2x128xf32>
    %cst_29 = arith.constant 1.000000e+00 : f32
    %86 = vector.broadcast %cst_29 : f32 to vector<2x128xf32>
    %87 = arith.addf %86, %85 : vector<2x128xf32>
    %88 = arith.divf %86, %87 : vector<2x128xf32>
    %89 = vector.extract_strided_slice %88 {offsets = [0, 0], sizes = [2, 32], strides = [1, 1]} : vector<2x128xf32> to vector<2x32xf32>
    %90 = vector.extract_strided_slice %88 {offsets = [0, 32], sizes = [2, 32], strides = [1, 1]} : vector<2x128xf32> to vector<2x32xf32>
    %91 = vector.extract_strided_slice %88 {offsets = [0, 64], sizes = [2, 32], strides = [1, 1]} : vector<2x128xf32> to vector<2x32xf32>
    %cst_30 = arith.constant 2.000000e+00 : f32
    %92 = vector.broadcast %cst_30 : f32 to vector<2x32xf32>
    %93 = arith.mulf %92, %91 : vector<2x32xf32>
    %cst_31 = arith.constant 1.000000e+00 : f32
    %94 = vector.broadcast %cst_31 : f32 to vector<2x32xf32>
    %95 = arith.subf %93, %94 : vector<2x32xf32>
    %96 = vector.extract_strided_slice %88 {offsets = [0, 96], sizes = [2, 32], strides = [1, 1]} : vector<2x128xf32> to vector<2x32xf32>
    %97 = arith.mulf %90, %55 : vector<2x32xf32>
    %98 = arith.mulf %89, %95 : vector<2x32xf32>
    %99 = arith.addf %97, %98 : vector<2x32xf32>
    %100 = math.tanh %99 : vector<2x32xf32>
    %101 = arith.mulf %96, %100 : vector<2x32xf32>
    %102 = vector.extract_strided_slice %5 {offsets = [0, 256], sizes = [2, 128], strides = [1, 1]} : vector<2x1024xf32> to vector<2x128xf32>
    %cst_32 = arith.constant dense<0.000000e+00> : vector<2x128xf32>
    %103 = tpu.matmul %78, %6, %cst_32 {dimension_numbers = #tpu.dot_dimension_numbers<[1], [0], [0], [1], [0, 0, 1, 1], [], []>} : vector<2x32xf32>, vector<32x128xf32>, vector<2x128xf32> -> vector<2x128xf32>
    %104 = arith.addf %102, %103 : vector<2x128xf32>
    %105 = arith.negf %104 : vector<2x128xf32>
    %106 = math.exp %105 : vector<2x128xf32>
    %cst_33 = arith.constant 1.000000e+00 : f32
    %107 = vector.broadcast %cst_33 : f32 to vector<2x128xf32>
    %108 = arith.addf %107, %106 : vector<2x128xf32>
    %109 = arith.divf %107, %108 : vector<2x128xf32>
    %110 = vector.extract_strided_slice %109 {offsets = [0, 0], sizes = [2, 32], strides = [1, 1]} : vector<2x128xf32> to vector<2x32xf32>
    %111 = vector.extract_strided_slice %109 {offsets = [0, 32], sizes = [2, 32], strides = [1, 1]} : vector<2x128xf32> to vector<2x32xf32>
    %112 = vector.extract_strided_slice %109 {offsets = [0, 64], sizes = [2, 32], strides = [1, 1]} : vector<2x128xf32> to vector<2x32xf32>
    %cst_34 = arith.constant 2.000000e+00 : f32
    %113 = vector.broadcast %cst_34 : f32 to vector<2x32xf32>
    %114 = arith.mulf %113, %112 : vector<2x32xf32>
    %cst_35 = arith.constant 1.000000e+00 : f32
    %115 = vector.broadcast %cst_35 : f32 to vector<2x32xf32>
    %116 = arith.subf %114, %115 : vector<2x32xf32>
    %117 = vector.extract_strided_slice %109 {offsets = [0, 96], sizes = [2, 32], strides = [1, 1]} : vector<2x128xf32> to vector<2x32xf32>
    %118 = arith.mulf %111, %76 : vector<2x32xf32>
    %119 = arith.mulf %110, %116 : vector<2x32xf32>
    %120 = arith.addf %118, %119 : vector<2x32xf32>
    %121 = math.tanh %120 : vector<2x32xf32>
    %122 = arith.mulf %117, %121 : vector<2x32xf32>
    %cst_36 = arith.constant dense<0.000000e+00> : vector<2x128xf32>
    %123 = tpu.matmul %122, %7, %cst_36 {dimension_numbers = #tpu.dot_dimension_numbers<[1], [0], [0], [1], [0, 0, 1, 1], [], []>} : vector<2x32xf32>, vector<32x128xf32>, vector<2x128xf32> -> vector<2x128xf32>
    %cst_37 = arith.constant dense<0.000000e+00> : vector<2x128xf32>
    %124 = tpu.matmul %101, %8, %cst_37 {dimension_numbers = #tpu.dot_dimension_numbers<[1], [0], [0], [1], [0, 0, 1, 1], [], []>} : vector<2x32xf32>, vector<32x128xf32>, vector<2x128xf32> -> vector<2x128xf32>
    %125 = arith.addf %123, %124 : vector<2x128xf32>
    %126 = vector.broadcast %9 : vector<1x128xf32> to vector<2x128xf32>
    %127 = arith.addf %125, %126 : vector<2x128xf32>
    %128 = arith.negf %127 : vector<2x128xf32>
    %129 = math.exp %128 : vector<2x128xf32>
    %cst_38 = arith.constant 1.000000e+00 : f32
    %130 = vector.broadcast %cst_38 : f32 to vector<2x128xf32>
    %131 = arith.addf %130, %129 : vector<2x128xf32>
    %132 = arith.divf %130, %131 : vector<2x128xf32>
    %133 = vector.extract_strided_slice %132 {offsets = [0, 0], sizes = [2, 32], strides = [1, 1]} : vector<2x128xf32> to vector<2x32xf32>
    %134 = vector.extract_strided_slice %132 {offsets = [0, 32], sizes = [2, 32], strides = [1, 1]} : vector<2x128xf32> to vector<2x32xf32>
    %135 = vector.extract_strided_slice %132 {offsets = [0, 64], sizes = [2, 32], strides = [1, 1]} : vector<2x128xf32> to vector<2x32xf32>
    %cst_39 = arith.constant 2.000000e+00 : f32
    %136 = vector.broadcast %cst_39 : f32 to vector<2x32xf32>
    %137 = arith.mulf %136, %135 : vector<2x32xf32>
    %cst_40 = arith.constant 1.000000e+00 : f32
    %138 = vector.broadcast %cst_40 : f32 to vector<2x32xf32>
    %139 = arith.subf %137, %138 : vector<2x32xf32>
    %140 = vector.extract_strided_slice %132 {offsets = [0, 96], sizes = [2, 32], strides = [1, 1]} : vector<2x128xf32> to vector<2x32xf32>
    %141 = arith.mulf %134, %99 : vector<2x32xf32>
    %142 = arith.mulf %133, %139 : vector<2x32xf32>
    %143 = arith.addf %141, %142 : vector<2x32xf32>
    %144 = math.tanh %143 : vector<2x32xf32>
    %145 = arith.mulf %140, %144 : vector<2x32xf32>
    %146 = vector.extract_strided_slice %5 {offsets = [0, 384], sizes = [2, 128], strides = [1, 1]} : vector<2x1024xf32> to vector<2x128xf32>
    %cst_41 = arith.constant dense<0.000000e+00> : vector<2x128xf32>
    %147 = tpu.matmul %122, %6, %cst_41 {dimension_numbers = #tpu.dot_dimension_numbers<[1], [0], [0], [1], [0, 0, 1, 1], [], []>} : vector<2x32xf32>, vector<32x128xf32>, vector<2x128xf32> -> vector<2x128xf32>
    %148 = arith.addf %146, %147 : vector<2x128xf32>
    %149 = arith.negf %148 : vector<2x128xf32>
    %150 = math.exp %149 : vector<2x128xf32>
    %cst_42 = arith.constant 1.000000e+00 : f32
    %151 = vector.broadcast %cst_42 : f32 to vector<2x128xf32>
    %152 = arith.addf %151, %150 : vector<2x128xf32>
    %153 = arith.divf %151, %152 : vector<2x128xf32>
    %154 = vector.extract_strided_slice %153 {offsets = [0, 0], sizes = [2, 32], strides = [1, 1]} : vector<2x128xf32> to vector<2x32xf32>
    %155 = vector.extract_strided_slice %153 {offsets = [0, 32], sizes = [2, 32], strides = [1, 1]} : vector<2x128xf32> to vector<2x32xf32>
    %156 = vector.extract_strided_slice %153 {offsets = [0, 64], sizes = [2, 32], strides = [1, 1]} : vector<2x128xf32> to vector<2x32xf32>
    %cst_43 = arith.constant 2.000000e+00 : f32
    %157 = vector.broadcast %cst_43 : f32 to vector<2x32xf32>
    %158 = arith.mulf %157, %156 : vector<2x32xf32>
    %cst_44 = arith.constant 1.000000e+00 : f32
    %159 = vector.broadcast %cst_44 : f32 to vector<2x32xf32>
    %160 = arith.subf %158, %159 : vector<2x32xf32>
    %161 = vector.extract_strided_slice %153 {offsets = [0, 96], sizes = [2, 32], strides = [1, 1]} : vector<2x128xf32> to vector<2x32xf32>
    %162 = arith.mulf %155, %120 : vector<2x32xf32>
    %163 = arith.mulf %154, %160 : vector<2x32xf32>
    %164 = arith.addf %162, %163 : vector<2x32xf32>
    %165 = math.tanh %164 : vector<2x32xf32>
    %166 = arith.mulf %161, %165 : vector<2x32xf32>
    %cst_45 = arith.constant dense<0.000000e+00> : vector<2x128xf32>
    %167 = tpu.matmul %166, %7, %cst_45 {dimension_numbers = #tpu.dot_dimension_numbers<[1], [0], [0], [1], [0, 0, 1, 1], [], []>} : vector<2x32xf32>, vector<32x128xf32>, vector<2x128xf32> -> vector<2x128xf32>
    %cst_46 = arith.constant dense<0.000000e+00> : vector<2x128xf32>
    %168 = tpu.matmul %145, %8, %cst_46 {dimension_numbers = #tpu.dot_dimension_numbers<[1], [0], [0], [1], [0, 0, 1, 1], [], []>} : vector<2x32xf32>, vector<32x128xf32>, vector<2x128xf32> -> vector<2x128xf32>
    %169 = arith.addf %167, %168 : vector<2x128xf32>
    %170 = vector.broadcast %9 : vector<1x128xf32> to vector<2x128xf32>
    %171 = arith.addf %169, %170 : vector<2x128xf32>
    %172 = arith.negf %171 : vector<2x128xf32>
    %173 = math.exp %172 : vector<2x128xf32>
    %cst_47 = arith.constant 1.000000e+00 : f32
    %174 = vector.broadcast %cst_47 : f32 to vector<2x128xf32>
    %175 = arith.addf %174, %173 : vector<2x128xf32>
    %176 = arith.divf %174, %175 : vector<2x128xf32>
    %177 = vector.extract_strided_slice %176 {offsets = [0, 0], sizes = [2, 32], strides = [1, 1]} : vector<2x128xf32> to vector<2x32xf32>
    %178 = vector.extract_strided_slice %176 {offsets = [0, 32], sizes = [2, 32], strides = [1, 1]} : vector<2x128xf32> to vector<2x32xf32>
    %179 = vector.extract_strided_slice %176 {offsets = [0, 64], sizes = [2, 32], strides = [1, 1]} : vector<2x128xf32> to vector<2x32xf32>
    %cst_48 = arith.constant 2.000000e+00 : f32
    %180 = vector.broadcast %cst_48 : f32 to vector<2x32xf32>
    %181 = arith.mulf %180, %179 : vector<2x32xf32>
    %cst_49 = arith.constant 1.000000e+00 : f32
    %182 = vector.broadcast %cst_49 : f32 to vector<2x32xf32>
    %183 = arith.subf %181, %182 : vector<2x32xf32>
    %184 = vector.extract_strided_slice %176 {offsets = [0, 96], sizes = [2, 32], strides = [1, 1]} : vector<2x128xf32> to vector<2x32xf32>
    %185 = arith.mulf %178, %143 : vector<2x32xf32>
    %186 = arith.mulf %177, %183 : vector<2x32xf32>
    %187 = arith.addf %185, %186 : vector<2x32xf32>
    %188 = math.tanh %187 : vector<2x32xf32>
    %189 = arith.mulf %184, %188 : vector<2x32xf32>
    %190 = vector.extract_strided_slice %5 {offsets = [0, 512], sizes = [2, 128], strides = [1, 1]} : vector<2x1024xf32> to vector<2x128xf32>
    %cst_50 = arith.constant dense<0.000000e+00> : vector<2x128xf32>
    %191 = tpu.matmul %166, %6, %cst_50 {dimension_numbers = #tpu.dot_dimension_numbers<[1], [0], [0], [1], [0, 0, 1, 1], [], []>} : vector<2x32xf32>, vector<32x128xf32>, vector<2x128xf32> -> vector<2x128xf32>
    %192 = arith.addf %190, %191 : vector<2x128xf32>
    %193 = arith.negf %192 : vector<2x128xf32>
    %194 = math.exp %193 : vector<2x128xf32>
    %cst_51 = arith.constant 1.000000e+00 : f32
    %195 = vector.broadcast %cst_51 : f32 to vector<2x128xf32>
    %196 = arith.addf %195, %194 : vector<2x128xf32>
    %197 = arith.divf %195, %196 : vector<2x128xf32>
    %198 = vector.extract_strided_slice %197 {offsets = [0, 0], sizes = [2, 32], strides = [1, 1]} : vector<2x128xf32> to vector<2x32xf32>
    %199 = vector.extract_strided_slice %197 {offsets = [0, 32], sizes = [2, 32], strides = [1, 1]} : vector<2x128xf32> to vector<2x32xf32>
    %200 = vector.extract_strided_slice %197 {offsets = [0, 64], sizes = [2, 32], strides = [1, 1]} : vector<2x128xf32> to vector<2x32xf32>
    %cst_52 = arith.constant 2.000000e+00 : f32
    %201 = vector.broadcast %cst_52 : f32 to vector<2x32xf32>
    %202 = arith.mulf %201, %200 : vector<2x32xf32>
    %cst_53 = arith.constant 1.000000e+00 : f32
    %203 = vector.broadcast %cst_53 : f32 to vector<2x32xf32>
    %204 = arith.subf %202, %203 : vector<2x32xf32>
    %205 = vector.extract_strided_slice %197 {offsets = [0, 96], sizes = [2, 32], strides = [1, 1]} : vector<2x128xf32> to vector<2x32xf32>
    %206 = arith.mulf %199, %164 : vector<2x32xf32>
    %207 = arith.mulf %198, %204 : vector<2x32xf32>
    %208 = arith.addf %206, %207 : vector<2x32xf32>
    %209 = math.tanh %208 : vector<2x32xf32>
    %210 = arith.mulf %205, %209 : vector<2x32xf32>
    %cst_54 = arith.constant dense<0.000000e+00> : vector<2x128xf32>
    %211 = tpu.matmul %210, %7, %cst_54 {dimension_numbers = #tpu.dot_dimension_numbers<[1], [0], [0], [1], [0, 0, 1, 1], [], []>} : vector<2x32xf32>, vector<32x128xf32>, vector<2x128xf32> -> vector<2x128xf32>
    %cst_55 = arith.constant dense<0.000000e+00> : vector<2x128xf32>
    %212 = tpu.matmul %189, %8, %cst_55 {dimension_numbers = #tpu.dot_dimension_numbers<[1], [0], [0], [1], [0, 0, 1, 1], [], []>} : vector<2x32xf32>, vector<32x128xf32>, vector<2x128xf32> -> vector<2x128xf32>
    %213 = arith.addf %211, %212 : vector<2x128xf32>
    %214 = vector.broadcast %9 : vector<1x128xf32> to vector<2x128xf32>
    %215 = arith.addf %213, %214 : vector<2x128xf32>
    %216 = arith.negf %215 : vector<2x128xf32>
    %217 = math.exp %216 : vector<2x128xf32>
    %cst_56 = arith.constant 1.000000e+00 : f32
    %218 = vector.broadcast %cst_56 : f32 to vector<2x128xf32>
    %219 = arith.addf %218, %217 : vector<2x128xf32>
    %220 = arith.divf %218, %219 : vector<2x128xf32>
    %221 = vector.extract_strided_slice %220 {offsets = [0, 0], sizes = [2, 32], strides = [1, 1]} : vector<2x128xf32> to vector<2x32xf32>
    %222 = vector.extract_strided_slice %220 {offsets = [0, 32], sizes = [2, 32], strides = [1, 1]} : vector<2x128xf32> to vector<2x32xf32>
    %223 = vector.extract_strided_slice %220 {offsets = [0, 64], sizes = [2, 32], strides = [1, 1]} : vector<2x128xf32> to vector<2x32xf32>
    %cst_57 = arith.constant 2.000000e+00 : f32
    %224 = vector.broadcast %cst_57 : f32 to vector<2x32xf32>
    %225 = arith.mulf %224, %223 : vector<2x32xf32>
    %cst_58 = arith.constant 1.000000e+00 : f32
    %226 = vector.broadcast %cst_58 : f32 to vector<2x32xf32>
    %227 = arith.subf %225, %226 : vector<2x32xf32>
    %228 = vector.extract_strided_slice %220 {offsets = [0, 96], sizes = [2, 32], strides = [1, 1]} : vector<2x128xf32> to vector<2x32xf32>
    %229 = arith.mulf %222, %187 : vector<2x32xf32>
    %230 = arith.mulf %221, %227 : vector<2x32xf32>
    %231 = arith.addf %229, %230 : vector<2x32xf32>
    %232 = math.tanh %231 : vector<2x32xf32>
    %233 = arith.mulf %228, %232 : vector<2x32xf32>
    %234 = vector.extract_strided_slice %5 {offsets = [0, 640], sizes = [2, 128], strides = [1, 1]} : vector<2x1024xf32> to vector<2x128xf32>
    %cst_59 = arith.constant dense<0.000000e+00> : vector<2x128xf32>
    %235 = tpu.matmul %210, %6, %cst_59 {dimension_numbers = #tpu.dot_dimension_numbers<[1], [0], [0], [1], [0, 0, 1, 1], [], []>} : vector<2x32xf32>, vector<32x128xf32>, vector<2x128xf32> -> vector<2x128xf32>
    %236 = arith.addf %234, %235 : vector<2x128xf32>
    %237 = arith.negf %236 : vector<2x128xf32>
    %238 = math.exp %237 : vector<2x128xf32>
    %cst_60 = arith.constant 1.000000e+00 : f32
    %239 = vector.broadcast %cst_60 : f32 to vector<2x128xf32>
    %240 = arith.addf %239, %238 : vector<2x128xf32>
    %241 = arith.divf %239, %240 : vector<2x128xf32>
    %242 = vector.extract_strided_slice %241 {offsets = [0, 0], sizes = [2, 32], strides = [1, 1]} : vector<2x128xf32> to vector<2x32xf32>
    %243 = vector.extract_strided_slice %241 {offsets = [0, 32], sizes = [2, 32], strides = [1, 1]} : vector<2x128xf32> to vector<2x32xf32>
    %244 = vector.extract_strided_slice %241 {offsets = [0, 64], sizes = [2, 32], strides = [1, 1]} : vector<2x128xf32> to vector<2x32xf32>
    %cst_61 = arith.constant 2.000000e+00 : f32
    %245 = vector.broadcast %cst_61 : f32 to vector<2x32xf32>
    %246 = arith.mulf %245, %244 : vector<2x32xf32>
    %cst_62 = arith.constant 1.000000e+00 : f32
    %247 = vector.broadcast %cst_62 : f32 to vector<2x32xf32>
    %248 = arith.subf %246, %247 : vector<2x32xf32>
    %249 = vector.extract_strided_slice %241 {offsets = [0, 96], sizes = [2, 32], strides = [1, 1]} : vector<2x128xf32> to vector<2x32xf32>
    %250 = arith.mulf %243, %208 : vector<2x32xf32>
    %251 = arith.mulf %242, %248 : vector<2x32xf32>
    %252 = arith.addf %250, %251 : vector<2x32xf32>
    %253 = math.tanh %252 : vector<2x32xf32>
    %254 = arith.mulf %249, %253 : vector<2x32xf32>
    %cst_63 = arith.constant dense<0.000000e+00> : vector<2x128xf32>
    %255 = tpu.matmul %254, %7, %cst_63 {dimension_numbers = #tpu.dot_dimension_numbers<[1], [0], [0], [1], [0, 0, 1, 1], [], []>} : vector<2x32xf32>, vector<32x128xf32>, vector<2x128xf32> -> vector<2x128xf32>
    %cst_64 = arith.constant dense<0.000000e+00> : vector<2x128xf32>
    %256 = tpu.matmul %233, %8, %cst_64 {dimension_numbers = #tpu.dot_dimension_numbers<[1], [0], [0], [1], [0, 0, 1, 1], [], []>} : vector<2x32xf32>, vector<32x128xf32>, vector<2x128xf32> -> vector<2x128xf32>
    %257 = arith.addf %255, %256 : vector<2x128xf32>
    %258 = vector.broadcast %9 : vector<1x128xf32> to vector<2x128xf32>
    %259 = arith.addf %257, %258 : vector<2x128xf32>
    %260 = arith.negf %259 : vector<2x128xf32>
    %261 = math.exp %260 : vector<2x128xf32>
    %cst_65 = arith.constant 1.000000e+00 : f32
    %262 = vector.broadcast %cst_65 : f32 to vector<2x128xf32>
    %263 = arith.addf %262, %261 : vector<2x128xf32>
    %264 = arith.divf %262, %263 : vector<2x128xf32>
    %265 = vector.extract_strided_slice %264 {offsets = [0, 0], sizes = [2, 32], strides = [1, 1]} : vector<2x128xf32> to vector<2x32xf32>
    %266 = vector.extract_strided_slice %264 {offsets = [0, 32], sizes = [2, 32], strides = [1, 1]} : vector<2x128xf32> to vector<2x32xf32>
    %267 = vector.extract_strided_slice %264 {offsets = [0, 64], sizes = [2, 32], strides = [1, 1]} : vector<2x128xf32> to vector<2x32xf32>
    %cst_66 = arith.constant 2.000000e+00 : f32
    %268 = vector.broadcast %cst_66 : f32 to vector<2x32xf32>
    %269 = arith.mulf %268, %267 : vector<2x32xf32>
    %cst_67 = arith.constant 1.000000e+00 : f32
    %270 = vector.broadcast %cst_67 : f32 to vector<2x32xf32>
    %271 = arith.subf %269, %270 : vector<2x32xf32>
    %272 = vector.extract_strided_slice %264 {offsets = [0, 96], sizes = [2, 32], strides = [1, 1]} : vector<2x128xf32> to vector<2x32xf32>
    %273 = arith.mulf %266, %231 : vector<2x32xf32>
    %274 = arith.mulf %265, %271 : vector<2x32xf32>
    %275 = arith.addf %273, %274 : vector<2x32xf32>
    %276 = math.tanh %275 : vector<2x32xf32>
    %277 = arith.mulf %272, %276 : vector<2x32xf32>
    %278 = vector.extract_strided_slice %5 {offsets = [0, 768], sizes = [2, 128], strides = [1, 1]} : vector<2x1024xf32> to vector<2x128xf32>
    %cst_68 = arith.constant dense<0.000000e+00> : vector<2x128xf32>
    %279 = tpu.matmul %254, %6, %cst_68 {dimension_numbers = #tpu.dot_dimension_numbers<[1], [0], [0], [1], [0, 0, 1, 1], [], []>} : vector<2x32xf32>, vector<32x128xf32>, vector<2x128xf32> -> vector<2x128xf32>
    %280 = arith.addf %278, %279 : vector<2x128xf32>
    %281 = arith.negf %280 : vector<2x128xf32>
    %282 = math.exp %281 : vector<2x128xf32>
    %cst_69 = arith.constant 1.000000e+00 : f32
    %283 = vector.broadcast %cst_69 : f32 to vector<2x128xf32>
    %284 = arith.addf %283, %282 : vector<2x128xf32>
    %285 = arith.divf %283, %284 : vector<2x128xf32>
    %286 = vector.extract_strided_slice %285 {offsets = [0, 0], sizes = [2, 32], strides = [1, 1]} : vector<2x128xf32> to vector<2x32xf32>
    %287 = vector.extract_strided_slice %285 {offsets = [0, 32], sizes = [2, 32], strides = [1, 1]} : vector<2x128xf32> to vector<2x32xf32>
    %288 = vector.extract_strided_slice %285 {offsets = [0, 64], sizes = [2, 32], strides = [1, 1]} : vector<2x128xf32> to vector<2x32xf32>
    %cst_70 = arith.constant 2.000000e+00 : f32
    %289 = vector.broadcast %cst_70 : f32 to vector<2x32xf32>
    %290 = arith.mulf %289, %288 : vector<2x32xf32>
    %cst_71 = arith.constant 1.000000e+00 : f32
    %291 = vector.broadcast %cst_71 : f32 to vector<2x32xf32>
    %292 = arith.subf %290, %291 : vector<2x32xf32>
    %293 = vector.extract_strided_slice %285 {offsets = [0, 96], sizes = [2, 32], strides = [1, 1]} : vector<2x128xf32> to vector<2x32xf32>
    %294 = arith.mulf %287, %252 : vector<2x32xf32>
    %295 = arith.mulf %286, %292 : vector<2x32xf32>
    %296 = arith.addf %294, %295 : vector<2x32xf32>
    %297 = math.tanh %296 : vector<2x32xf32>
    %298 = arith.mulf %293, %297 : vector<2x32xf32>
    %cst_72 = arith.constant dense<0.000000e+00> : vector<2x128xf32>
    %299 = tpu.matmul %298, %7, %cst_72 {dimension_numbers = #tpu.dot_dimension_numbers<[1], [0], [0], [1], [0, 0, 1, 1], [], []>} : vector<2x32xf32>, vector<32x128xf32>, vector<2x128xf32> -> vector<2x128xf32>
    %cst_73 = arith.constant dense<0.000000e+00> : vector<2x128xf32>
    %300 = tpu.matmul %277, %8, %cst_73 {dimension_numbers = #tpu.dot_dimension_numbers<[1], [0], [0], [1], [0, 0, 1, 1], [], []>} : vector<2x32xf32>, vector<32x128xf32>, vector<2x128xf32> -> vector<2x128xf32>
    %301 = arith.addf %299, %300 : vector<2x128xf32>
    %302 = vector.broadcast %9 : vector<1x128xf32> to vector<2x128xf32>
    %303 = arith.addf %301, %302 : vector<2x128xf32>
    %304 = arith.negf %303 : vector<2x128xf32>
    %305 = math.exp %304 : vector<2x128xf32>
    %cst_74 = arith.constant 1.000000e+00 : f32
    %306 = vector.broadcast %cst_74 : f32 to vector<2x128xf32>
    %307 = arith.addf %306, %305 : vector<2x128xf32>
    %308 = arith.divf %306, %307 : vector<2x128xf32>
    %309 = vector.extract_strided_slice %308 {offsets = [0, 0], sizes = [2, 32], strides = [1, 1]} : vector<2x128xf32> to vector<2x32xf32>
    %310 = vector.extract_strided_slice %308 {offsets = [0, 32], sizes = [2, 32], strides = [1, 1]} : vector<2x128xf32> to vector<2x32xf32>
    %311 = vector.extract_strided_slice %308 {offsets = [0, 64], sizes = [2, 32], strides = [1, 1]} : vector<2x128xf32> to vector<2x32xf32>
    %cst_75 = arith.constant 2.000000e+00 : f32
    %312 = vector.broadcast %cst_75 : f32 to vector<2x32xf32>
    %313 = arith.mulf %312, %311 : vector<2x32xf32>
    %cst_76 = arith.constant 1.000000e+00 : f32
    %314 = vector.broadcast %cst_76 : f32 to vector<2x32xf32>
    %315 = arith.subf %313, %314 : vector<2x32xf32>
    %316 = vector.extract_strided_slice %308 {offsets = [0, 96], sizes = [2, 32], strides = [1, 1]} : vector<2x128xf32> to vector<2x32xf32>
    %317 = arith.mulf %310, %275 : vector<2x32xf32>
    %318 = arith.mulf %309, %315 : vector<2x32xf32>
    %319 = arith.addf %317, %318 : vector<2x32xf32>
    %320 = math.tanh %319 : vector<2x32xf32>
    %321 = arith.mulf %316, %320 : vector<2x32xf32>
    %322 = vector.extract_strided_slice %5 {offsets = [0, 896], sizes = [2, 128], strides = [1, 1]} : vector<2x1024xf32> to vector<2x128xf32>
    %cst_77 = arith.constant dense<0.000000e+00> : vector<2x128xf32>
    %323 = tpu.matmul %298, %6, %cst_77 {dimension_numbers = #tpu.dot_dimension_numbers<[1], [0], [0], [1], [0, 0, 1, 1], [], []>} : vector<2x32xf32>, vector<32x128xf32>, vector<2x128xf32> -> vector<2x128xf32>
    %324 = arith.addf %322, %323 : vector<2x128xf32>
    %325 = arith.negf %324 : vector<2x128xf32>
    %326 = math.exp %325 : vector<2x128xf32>
    %cst_78 = arith.constant 1.000000e+00 : f32
    %327 = vector.broadcast %cst_78 : f32 to vector<2x128xf32>
    %328 = arith.addf %327, %326 : vector<2x128xf32>
    %329 = arith.divf %327, %328 : vector<2x128xf32>
    %330 = vector.extract_strided_slice %329 {offsets = [0, 0], sizes = [2, 32], strides = [1, 1]} : vector<2x128xf32> to vector<2x32xf32>
    %331 = vector.extract_strided_slice %329 {offsets = [0, 32], sizes = [2, 32], strides = [1, 1]} : vector<2x128xf32> to vector<2x32xf32>
    %332 = vector.extract_strided_slice %329 {offsets = [0, 64], sizes = [2, 32], strides = [1, 1]} : vector<2x128xf32> to vector<2x32xf32>
    %cst_79 = arith.constant 2.000000e+00 : f32
    %333 = vector.broadcast %cst_79 : f32 to vector<2x32xf32>
    %334 = arith.mulf %333, %332 : vector<2x32xf32>
    %cst_80 = arith.constant 1.000000e+00 : f32
    %335 = vector.broadcast %cst_80 : f32 to vector<2x32xf32>
    %336 = arith.subf %334, %335 : vector<2x32xf32>
    %337 = vector.extract_strided_slice %329 {offsets = [0, 96], sizes = [2, 32], strides = [1, 1]} : vector<2x128xf32> to vector<2x32xf32>
    %338 = arith.mulf %331, %296 : vector<2x32xf32>
    %339 = arith.mulf %330, %336 : vector<2x32xf32>
    %340 = arith.addf %338, %339 : vector<2x32xf32>
    %341 = math.tanh %340 : vector<2x32xf32>
    %342 = arith.mulf %337, %341 : vector<2x32xf32>
    %cst_81 = arith.constant dense<0.000000e+00> : vector<2x128xf32>
    %343 = tpu.matmul %342, %7, %cst_81 {dimension_numbers = #tpu.dot_dimension_numbers<[1], [0], [0], [1], [0, 0, 1, 1], [], []>} : vector<2x32xf32>, vector<32x128xf32>, vector<2x128xf32> -> vector<2x128xf32>
    %cst_82 = arith.constant dense<0.000000e+00> : vector<2x128xf32>
    %344 = tpu.matmul %321, %8, %cst_82 {dimension_numbers = #tpu.dot_dimension_numbers<[1], [0], [0], [1], [0, 0, 1, 1], [], []>} : vector<2x32xf32>, vector<32x128xf32>, vector<2x128xf32> -> vector<2x128xf32>
    %345 = arith.addf %343, %344 : vector<2x128xf32>
    %346 = vector.broadcast %9 : vector<1x128xf32> to vector<2x128xf32>
    %347 = arith.addf %345, %346 : vector<2x128xf32>
    %348 = arith.negf %347 : vector<2x128xf32>
    %349 = math.exp %348 : vector<2x128xf32>
    %cst_83 = arith.constant 1.000000e+00 : f32
    %350 = vector.broadcast %cst_83 : f32 to vector<2x128xf32>
    %351 = arith.addf %350, %349 : vector<2x128xf32>
    %352 = arith.divf %350, %351 : vector<2x128xf32>
    %353 = vector.extract_strided_slice %352 {offsets = [0, 0], sizes = [2, 32], strides = [1, 1]} : vector<2x128xf32> to vector<2x32xf32>
    %354 = vector.extract_strided_slice %352 {offsets = [0, 32], sizes = [2, 32], strides = [1, 1]} : vector<2x128xf32> to vector<2x32xf32>
    %355 = vector.extract_strided_slice %352 {offsets = [0, 64], sizes = [2, 32], strides = [1, 1]} : vector<2x128xf32> to vector<2x32xf32>
    %cst_84 = arith.constant 2.000000e+00 : f32
    %356 = vector.broadcast %cst_84 : f32 to vector<2x32xf32>
    %357 = arith.mulf %356, %355 : vector<2x32xf32>
    %cst_85 = arith.constant 1.000000e+00 : f32
    %358 = vector.broadcast %cst_85 : f32 to vector<2x32xf32>
    %359 = arith.subf %357, %358 : vector<2x32xf32>
    %360 = vector.extract_strided_slice %352 {offsets = [0, 96], sizes = [2, 32], strides = [1, 1]} : vector<2x128xf32> to vector<2x32xf32>
    %361 = arith.mulf %354, %319 : vector<2x32xf32>
    %362 = arith.mulf %353, %359 : vector<2x32xf32>
    %363 = arith.addf %361, %362 : vector<2x32xf32>
    %364 = math.tanh %363 : vector<2x32xf32>
    %365 = arith.mulf %360, %364 : vector<2x32xf32>
    %c104 = arith.constant 104 : index
    %c0_86 = arith.constant 0 : index
    %366 = vector.load %arg2[%c104, %c0_86] : memref<144x128xf32, #tpu.memory_space<vmem>>, vector<32x128xf32>
    %c136 = arith.constant 136 : index
    %c0_87 = arith.constant 0 : index
    %367 = vector.load %arg2[%c136, %c0_87] : memref<144x128xf32, #tpu.memory_space<vmem>>, vector<1x128xf32>
    %cst_88 = arith.constant dense<0.000000e+00> : vector<2x128xf32>
    %368 = tpu.matmul %365, %366, %cst_88 {dimension_numbers = #tpu.dot_dimension_numbers<[1], [0], [0], [1], [0, 0, 1, 1], [], []>} : vector<2x32xf32>, vector<32x128xf32>, vector<2x128xf32> -> vector<2x128xf32>
    %369 = vector.broadcast %367 : vector<1x128xf32> to vector<2x128xf32>
    %370 = arith.addf %368, %369 : vector<2x128xf32>
    %c0_89 = arith.constant 0 : index
    %c0_90 = arith.constant 0 : index
    %371 = vector.load %arg3[%c0_89, %c0_90] : memref<2x128xf32, #tpu.memory_space<vmem>>, vector<2x128xf32>
    tpu.vector_store %arg3[%c0_89, %c0_90], %370 {strides = array<i32>} : memref<2x128xf32, #tpu.memory_space<vmem>>, vector<2x128xf32>,
    return
  }
}

</mosaic_0001>

<bundles_post_ra>
// kernel: lstm_forward.1
= control target key start
LH: loop header
LB: loop body
LE: loop exit
PB: predicated region body
PF: predicated region fallthrough
CT: control target
= control target key end

     0   :  { %8 = vsyncpa [#allocation3], 0  ;;  %s3920_s0 = inlined_call_operand.vmem [shape: f32[2,32], index: 0, kind: input, shape index: {}]   ;;  %s3921_s1 = inlined_call_operand.hbm [shape: f32[40,1024], index: 1, kind: input, shape index: {}]   ;;  %s3922_s2 = inlined_call_operand.hbm [shape: f32[144,128], index: 2, kind: input, shape index: {}]   ;;  %s3923_s3 = inlined_call_operand.vmem [shape: f32[2,128], index: 3, kind: output, shape index: {}]  }
   0x1   :  { %9 = vsyncpa [#allocation5], 0  ;;  %s3487_s12 = smov [#allocation2]   ;;  %s3439_s16 = scalar_lea.hbm %s3921_s1, 5120 }
   0x2   :  { %s17_s13 = sshll.u32 %s3487_s12, 4  ;;  %p3440_p0 = scmp.ne.s32.totalorder %s3921_s1, %s3439_s16  ;;  %s18_s13 = int_to_ptr.vmem [resolvable:$true] %s17_s13 }
   0x3   :  { %p3443_p1 = scmp.lt.u32.totalorder %s3439_s16, %s3921_s1 }
   0x5   :  { %p3445_p2 = pnand %p3443_p1, %p3440_p0 }
   0x7   :  { %3448 = shalt.err (!%p3445_p2)
}
   0x8   :  { %s3449_s21 = scalar_lea.vmem %s18_s13, 5120  ;;  %p3454_p4 = scmp.lt.s32.totalorder %s18_s13, %s18_s13 }
   0x9   :  { %p3450_p3 = scmp.ne.s32.totalorder %s18_s13, %s3449_s21  ;;  %p3455_p5 = scmp.lt.s32.totalorder %s3449_s21, %s3449_s21 }
   0xb   :  { %p3456_p6 = por %p3455_p5, %p3454_p4 }
   0xd   :  { %p3457_p7 = pnand %p3456_p6, %p3450_p3 }
   0xf   :  { %3460 = shalt.err (!%p3457_p7)
}
  0x10   :  { %s3488_s22 = smov 1024   ;;  %s3489_s23 = smov 64  }
  0x11   :  { %23 = dma.hbm_to_vmem [thread:$0]  %s3921_s1, 5120, %s18_s13, [#allocation3], %s3488_s22, %s3488_s22, %s3489_s23  }
  0x12   :  { %s3490_s26 = smov [#allocation4]   ;;  %s3461_s30 = scalar_lea.hbm %s3922_s2, 2304 }
  0x13   :  { %s29_s27 = sshll.u32 %s3490_s26, 4  ;;  %p3462_p8 = scmp.ne.s32.totalorder %s3922_s2, %s3461_s30  ;;  %s30_s27 = int_to_ptr.vmem [resolvable:$true] %s29_s27 }
  0x14   :  { %p3465_p9 = scmp.lt.u32.totalorder %s3461_s30, %s3922_s2 }
  0x16   :  { %p3467_p10 = pnand %p3465_p9, %p3462_p8 }
  0x18   :  { %3470 = shalt.err (!%p3467_p10)
}
  0x19   :  { %s3471_s8 = scalar_lea.vmem %s30_s27, 2304  ;;  %p3476_p12 = scmp.lt.s32.totalorder %s30_s27, %s30_s27 }
  0x1a   :  { %p3472_p11 = scmp.ne.s32.totalorder %s30_s27, %s3471_s8  ;;  %p3477_p13 = scmp.lt.s32.totalorder %s3471_s8, %s3471_s8 }
  0x1c   :  { %p3478_p0 = por %p3477_p13, %p3476_p12 }
  0x1e   :  { %p3479_p1 = pnand %p3478_p0, %p3472_p11 }
  0x20   :  { %3482 = shalt.err (!%p3479_p1)
}
  0x21   :  { %s3491_s1 = smov 128   ;;  %s3492_s9 = smov 8  }
  0x22   :  { %35 = dma.hbm_to_vmem [thread:$0]  %s3922_s2, 2304, %s30_s27, [#allocation5], %s3491_s1, %s3491_s1, %s3492_s9  }
  0x23   :  { %3483 = dma.done.wait [#allocation3], 5120  }
  0x24   :  { %3484 = vsyncadd [#allocation3], 4294962176 }
  0x25   :  { %3485 = dma.done.wait [#allocation5], 2304  }
  0x26   :  { %3486 = vsyncadd [#allocation5], 4294964992  ;;  %v3493_v0 = vmov 0.0   ;;  %v44_v1 = vld [vmem:[#allocation2 + $0x8] sm:$0xff]  ;;  %v43_v3 = vld [vmem:[#allocation2] sm:$0xff]  ;;  %vm120_vm0 = vcmask 261120   ;;  %v80_v33 = vlaneseq }
  0x27   :  { %188 = vmatprep.mubr.f32.mxu0 %v3493_v0  ;;  %259 = vmatprep.mubr.f32.mxu1 %v3493_v0  ;;  %v52_v2 = vld [vmem:[#allocation2 + $0x48] sm:$0xff]  ;;  %v51_v5 = vld [vmem:[#allocation2 + $0x40] sm:$0xff]  ;;  %v3494_v29 = vmov 0.0|0.0   ;;  %v410_v30 = vld [vmem:[#allocation4 + $0x10] sm:$0xff]  ;;  %vm3495_vm1 = vmmov 0  }
  0x28   :  { %v3151_v4 = vpack.c.bf16 %v52_v2, %v44_v1  ;;  %v60_v6 = vld [vmem:[#allocation2 + $0x88] sm:$0xff]  ;;  %v3153_v8 = vpack.c.bf16 %v51_v5, %v43_v3  ;;  %v59_v10 = vld [vmem:[#allocation2 + $0x80] sm:$0xff]  ;;  %v411_v31 = vld [vmem:[#allocation4 + $0x18] sm:$0xff]  ;;  %v3570_v36 = vshrl.u32 %v80_v33, 7 }
  0x29   :  { %v68_v7 = vld [vmem:[#allocation2 + $0xc8] sm:$0xff]  ;;  %v67_v11 = vld [vmem:[#allocation2 + $0xc0] sm:$0xff]  ;;  %v3558_v32 = vpack.c.bf16 %v411_v31, %v410_v30  ;;  %v46_v59 = vld [vmem:[#allocation2 + $0x18] sm:$0xff] }
  0x2a   :  { %v3155_v9 = vpack.c.bf16 %v68_v7, %v60_v6  ;;  %3152 = vmatprep.subr.bf16.mxu0 %v3151_v4  ;;  %v48_v12 = vld [vmem:[#allocation2 + $0x28] sm:$0xff]  ;;  %v3157_v14 = vpack.c.bf16 %v67_v11, %v59_v10  ;;  %v47_v16 = vld [vmem:[#allocation2 + $0x20] sm:$0xff]  ;;  %v82_v40 = vsub.s32 0, %v3570_v36  ;;  %v54_v60 = vld [vmem:[#allocation2 + $0x58] sm:$0xff] }
  0x2b   :  { %v56_v13 = vld [vmem:[#allocation2 + $0x68] sm:$0xff]  ;;  %3154 = vmatpush1.bf16.msra.mxu0 %v3153_v8  ;;  %v55_v17 = vld [vmem:[#allocation2 + $0x60] sm:$0xff]  ;;  %v45_v61 = vld [vmem:[#allocation2 + $0x10] sm:$0xff]  ;;  %v3159_v62 = vpack.c.bf16 %v54_v60, %v46_v59 }
  0x2c   :  { %3156 = vmatprep.subr.bf16.mxu0 %v3155_v9  ;;  %v3167_v15 = vpack.c.bf16 %v56_v13, %v48_v12  ;;  %v64_v18 = vld [vmem:[#allocation2 + $0xa8] sm:$0xff]  ;;  %v3547_v20 = vld [vmem:[%s3920_s0] sm:$0x3]  ;;  %v3169_v21 = vpack.c.bf16 %v55_v17, %v47_v16  ;;  %s3496_s0 = smov 32   ;;  %v53_v63 = vld [vmem:[#allocation2 + $0x50] sm:$0xff] }
  0x2d   :  { %v72_v19 = vld [vmem:[#allocation2 + $0xe8] sm:$0xff]  ;;  %v63_v23 = vld [vmem:[#allocation2 + $0xa0] sm:$0xff]  ;;  %v62_v1 = vld [vmem:[#allocation2 + $0x98] sm:$0xff]  ;;  %v3161_v3 = vpack.c.bf16 %v53_v63, %v45_v61  ;;  %3160 = vmatprep.subr.bf16.mxu1 %v3159_v62 }
  0x2e   :  { %v3171_v22 = vpack.c.bf16 %v72_v19, %v64_v18  ;;  %v71_v24 = vld [vmem:[#allocation2 + $0xe0] sm:$0xff]  ;;  %v409_v27 = vld [vmem:[#allocation4 + $0x8] sm:$0xff]  ;;  %v70_v2 = vld [vmem:[#allocation2 + $0xd8] sm:$0xff] }
  0x2f   :  { %3158 = vmatpush1.bf16.msra.mxu0 %v3157_v14  ;;  %v3173_v25 = vpack.c.bf16 %v71_v24, %v63_v23  ;;  %v408_v26 = vld [vmem:[#allocation4] sm:$0xff]  ;;  %v3163_v4 = vpack.c.bf16 %v70_v2, %v62_v1  ;;  %v61_v5 = vld [vmem:[#allocation2 + $0x90] sm:$0xff]  ;;  %v50_v7 = vld [vmem:[#allocation2 + $0x38] sm:$0xff]  ;;  %3162 = vmatpush1.bf16.msra.mxu1 %v3161_v3 }
  0x30   :  { %3168 = vmatprep.subr.bf16.mxu0 %v3167_v15  ;;  %v3552_v28 = vpack.c.bf16 %v409_v27, %v408_v26  ;;  %v76_v37 = vld [vmem:[#allocation2 + $0x100] ss:$8 sm:$0xf] }
  0x31   :  { %v77_v38 = vld [vmem:[#allocation2 + $0x100] ss:$8 sm:$0xf0]  ;;  %3164 = vmatprep.subr.bf16.mxu1 %v3163_v4 }
  0x32   :  { %2690 = vmatmul.mubr.msk.f32.vlgmr.msra.gmra.mrb[0].mxu0 %vm120_vm0, %v3547_v20  ;;  %v3572_v39 = vor.u32 %v77_v38, %v76_v37  ;;  %v69_v6 = vld [vmem:[#allocation2 + $0xd0] sm:$0xff]  ;;  %v58_v8 = vld [vmem:[#allocation2 + $0x78] sm:$0xff]  ;;  %v412_v15 = vld [vmem:[#allocation4 + $0x20] sm:$0xff] }
  0x33   :  { %3170 = vmatpush1.bf16.msra.mxu0 %v3169_v21  ;;  %330 = vmatprep.mubr.f32.mxu0 %v3493_v0  ;;  %v3165_v9 = vpack.c.bf16 %v69_v6, %v61_v5  ;;  %v3175_v10 = vpack.c.bf16 %v58_v8, %v50_v7  ;;  %v49_v11 = vld [vmem:[#allocation2 + $0x30] sm:$0xff]  ;;  %v66_v13 = vld [vmem:[#allocation2 + $0xb8] sm:$0xff]  ;;  %v413_v16 = vld [vmem:[#allocation4 + $0x28] sm:$0xff] }
  0x34   :  { %3172 = vmatprep.subr.bf16.mxu0 %v3171_v22  ;;  %v83_v43 = vrot.slane %v3572_v39, %v82_v40  ;;  %v57_v12 = vld [vmem:[#allocation2 + $0x70] sm:$0xff]  ;;  %v74_v14 = vld [vmem:[#allocation2 + $0xf8] sm:$0xff]  ;;  %v3590_v21 = vpack.c.bf16 %v413_v16, %v412_v15  ;;  %v416_v30 = vld [vmem:[#allocation4 + $0x40] sm:$0xff] }
  0x35   :  { %v414_v17 = vld [vmem:[#allocation4 + $0x30] sm:$0xff]  ;;  %v415_v18 = vld [vmem:[#allocation4 + $0x38] sm:$0xff]  ;;  %3166 = vmatpush1.bf16.msra.mxu1 %v3165_v9  ;;  %v3177_v19 = vpack.c.bf16 %v57_v12, %v49_v11  ;;  %v3179_v22 = vpack.c.bf16 %v74_v14, %v66_v13  ;;  %v417_v31 = vld [vmem:[#allocation4 + $0x48] sm:$0xff] }
  0x36   :  { %3176 = vmatprep.subr.bf16.mxu1 %v3175_v10  ;;  %v65_v23 = vld [vmem:[#allocation2 + $0xb0] sm:$0xff]  ;;  %v3593_v26 = vpack.c.bf16 %v415_v18, %v414_v17  ;;  %v3602_v33 = vpack.c.bf16 %v417_v31, %v416_v30  ;;  %v419_v37 = vld [vmem:[#allocation4 + $0x58] sm:$0xff] }
  0x37   :  { %3174 = vmatpush1.bf16.msra.mxu0 %v3173_v25  ;;  %v73_v24 = vld [vmem:[#allocation2 + $0xf0] sm:$0xff] }
  0x38   :  { %3183 = vmatprep.subr.bf16.mxu0 %v3494_v29  ;;  %2691 = vmatmul.mubr.msk.f32.vlgmr.msra.gmra.mrb[0].mxu1 %vm120_vm0, %v3547_v20  ;;  %v3181_v27 = vpack.c.bf16 %v73_v24, %v65_v23 }
  0x39   :  { %3178 = vmatpush1.bf16.msra.mxu1 %v3177_v19  ;;  %401 = vmatprep.mubr.f32.mxu1 %v3493_v0 }
  0x3a   :  { %2692 = vmatmul.mubr.msk.f32.vlgmr.msra.gmra.mrb[2].mxu0 %vm120_vm0, %v3547_v20  ;;  %3180 = vmatprep.subr.bf16.mxu1 %v3179_v22 }
  0x3b   :  { %3185 = vmatpush3.bf16.msra.mxu0 %v3552_v28  ;;  %2884 = vmatprep.mubr.msk.f32.mxu0 %vm3495_vm1, %v3493_v0 }
  0x3c   :  { %3186 = vmatprep.subr.bf16.mxu0 %v3494_v29 }
  0x3d   :  { %3182 = vmatpush1.bf16.msra.mxu1 %v3181_v27 }
  0x3e   :  { %3189 = vmatprep.subr.bf16.mxu1 %v3494_v29 }
  0x3f   :  { %3188 = vmatpush3.bf16.msra.mxu0 %v3558_v32 }
  0x40   :  { %3195 = vmatprep.subr.bf16.mxu0 %v3494_v29  ;;  %2693 = vmatmul.mubr.msk.f32.vlgmr.msra.gmra.mrb[2].mxu1 %vm120_vm0, %v3547_v20 }
  0x41   :  { %3191 = vmatpush3.bf16.msra.mxu1 %v3602_v33  ;;  %2895 = vmatprep.mubr.msk.f32.mxu1 %vm3495_vm1, %v3493_v0 }
  0x42   :  { %2885 = vmatmul.mubr.f32.vlgmr.msra.gmra.mrb[4].mxu0 %v3493_v0  ;;  %3192 = vmatprep.subr.bf16.mxu1 %v3494_v29 }
  0x43   :  { %2906 = vmatprep.mubr.msk.f32.mxu0 %vm3495_vm1, %v3493_v0  ;;  %3197 = vmatpush3.bf16.msra.mxu0 %v3590_v21 }
  0x44   :  { %3198 = vmatprep.subr.bf16.mxu0 %v3494_v29 }
  0x47   :  { %3200 = vmatpush3.bf16.msra.mxu0 %v3593_v26 }
  0x48   :  { %3207 = vmatprep.subr.bf16.mxu0 %v3494_v29 }
 0x105   :  { %v190_v34 = vpop.f32.mrb[0].mxu0 }
 0x106   :  { %v3568_v35 = vpop.f32.mrb[1].mxu0  ;;  %v191_v44 = vadd.f32 %v190_v34, %v83_v43  ;;  %v418_v34 = vld [vmem:[#allocation4 + $0x50] sm:$0xff] }
 0x107   :  { %v3608_v38 = vpack.c.bf16 %v419_v37, %v418_v34  ;;  %v90_v37 = vsub.s32 2, %v3570_v36 }
 0x109   :  { %3194 = vmatpush3.bf16.msra.mxu1 %v3608_v38 }
 0x10a   :  { %3201 = vmatprep.subr.bf16.mxu1 %v3494_v29 }
 0x10b   :  { %v3624_v43 = vpop.f32.mrb[0].mxu1 }
 0x10c   :  { %2896 = vmatmul.mubr.f32.vlgmr.msra.gmra.mrb[4].mxu1 %v3493_v0 }
 0x10d   :  { %v3575_v41 = vpop.f32.mrb[2].mxu0  ;;  %3203 = vmatpush3.bf16.msra.mxu1 %v3552_v28  ;;  %2917 = vmatprep.mubr.msk.f32.mxu1 %vm3495_vm1, %v3493_v0 }
 0x10e   :  { %v3577_v42 = vpop.f32.mrb[3].mxu0  ;;  %3204 = vmatprep.subr.bf16.mxu1 %v3494_v29 }
 0x111   :  { %3206 = vmatpush3.bf16.msra.mxu1 %v3558_v32 }
 0x112   :  { %3213 = vmatprep.subr.bf16.mxu1 %v3494_v29 }
 0x115   :  { %v490_v45 = vpop.f32.mrb[4].mxu0 }
 0x116   :  { %v494_v46 = vadd.f32 %v490_v45, %v191_v44  ;;  %v2886_v47 = vpop.f32.mrb[5].mxu0  ;;  %v3626_v44 = vpop.f32.mrb[1].mxu1 }
 0x117   :  { %v3628_v45 = vpop.f32.mrb[2].mxu1 }
 0x118   :  { %v2694_v48 = vmul.f32 -1.442695, %v494_v46  ;;  %v3630_v46 = vpop.f32.mrb[3].mxu1 }
 0x11a   :  { %3343 = vpow2.f32 %v2694_v48 }
 0x124   :  { %v3344_v49 = vpop.eup %3343 }
 0x125   :  { %v498_v50 = vadd.f32 1.0, %v3344_v49 }
 0x127   :  { %3345 = vrcp.f32 %v498_v50  ;;  %v86_v50 = vsub.s32 1, %v3570_v36 }
 0x131   :  { %v3580_v51 = vpop.eup %3345 }
 0x132   :  { %v501_v52 = vmul.f32 2.0, %v3580_v51  ;;  %v503_v56 = vmul.f32 0.0, %v3580_v51 }
 0x134   :  { %v2695_v53 = vadd.f32 -1.0, %v501_v52 }
 0x136   :  { %505 = vrot.lane.b32.xlu0 %v2695_v53, %s3489_s23  ;;  %v3649_v53 = vld [vmem:[#allocation4 + $0x60] ss:$0 sm:$0xff] }
 0x1a8   :  { %v506_v54 = vpop.permute.xlu0 %505 }
 0x1a9   :  { %v508_v55 = vmul.f32 %v3580_v51, %v506_v54 }
 0x1ab   :  { %510 = vrot.lane.b32.xlu0 %v508_v55, %s3496_s0 }
 0x1df   :  { %v586_v47 = vpop.f32.mrb[4].mxu1 }
 0x1e0   :  { %v2897_v48 = vpop.f32.mrb[5].mxu1 }
 0x21d   :  { %v511_v57 = vpop.permute.xlu0 %510 }
 0x21e   :  { %v3587_v58 = vadd.f32 %v511_v57, %v503_v56 }
 0x220   :  { %3347 = vtanh.f32 %v3587_v58 }
 0x22a   :  { %v3348_v25 = vpop.eup %3347 }
 0x22b   :  { %516 = vrot.lane.b32.xlu1 %v3348_v25, %s3489_s23 }
 0x29d   :  { %v517_v20 = vpop.permute.xlu1 %516 }
 0x29e   :  { %v519_v40 = vmul.f32 %v3580_v51, %v517_v20  ;;  %v87_v51 = vrot.slane %v3572_v39, %v86_v50 }
 0x2a0   :  { %591 = vrot.lane.b32.xlu1 %v519_v40, %s3496_s0  ;;  %v193_v52 = vadd.f32 %v3568_v35, %v87_v51 }
 0x312   :  { %v592_v49 = vpop.permute.xlu1 %591 }
 0x313   :  { %2907 = vmatmul.mubr.msk.f32.vlgmr.msra.gmra.mrb[6].mxu0 %vm120_vm0, %v592_v49  ;;  %2918 = vmatmul.mubr.msk.f32.vlgmr.msra.gmra.mrb[6].mxu1 %vm120_vm0, %v592_v49  ;;  %v91_v49 = vrot.slane %v3572_v39, %v90_v37 }
 0x314   :  { %3215 = vmatpush3.bf16.msra.mxu1 %v3590_v21  ;;  %3209 = vmatpush3.bf16.msra.mxu0 %v3602_v33 }
 0x315   :  { %3216 = vmatprep.subr.bf16.mxu1 %v3494_v29  ;;  %3210 = vmatprep.subr.bf16.mxu0 %v3494_v29 }
 0x316   :  { %2939 = vmatprep.mubr.msk.f32.mxu1 %vm3495_vm1, %v3493_v0  ;;  %2928 = vmatprep.mubr.msk.f32.mxu0 %vm3495_vm1, %v3493_v0 }
 0x318   :  { %3218 = vmatpush3.bf16.msra.mxu1 %v3593_v26  ;;  %3212 = vmatpush3.bf16.msra.mxu0 %v3608_v38 }
 0x319   :  { %3219 = vmatprep.subr.bf16.mxu0 %v3494_v29  ;;  %3225 = vmatprep.subr.bf16.mxu1 %v3494_v29 }
 0x3e6   :  { %v661_v54 = vpop.f32.mrb[6].mxu0  ;;  %v761_v55 = vpop.f32.mrb[6].mxu1 }
 0x3e7   :  { %v662_v56 = vadd.f32 %v661_v54, %v586_v47  ;;  %v765_v57 = vadd.f32 %v761_v55, %v193_v52  ;;  %v2908_v59 = vpop.f32.mrb[7].mxu0  ;;  %v2919_v60 = vpop.f32.mrb[7].mxu1  ;;  %v262_v52 = vadd.f32 %v3624_v43, %v91_v49 }
 0x3e9   :  { %v669_v61 = vadd.f32 %v3649_v53, %v662_v56  ;;  %v2701_v62 = vmul.f32 -1.442695, %v765_v57 }
 0x3eb   :  { %v2698_v63 = vmul.f32 -1.442695, %v669_v61  ;;  %3349 = vpow2.f32 %v2701_v62 }
 0x3ed   :  { %3351 = vpow2.f32 %v2698_v63 }
 0x3f5   :  { %v3350_v1 = vpop.eup %3349 }
 0x3f6   :  { %v769_v2 = vadd.f32 1.0, %v3350_v1 }
 0x3f7   :  { %v3352_v3 = vpop.eup %3351 }
 0x3f8   :  { %v673_v4 = vadd.f32 1.0, %v3352_v3  ;;  %3353 = vrcp.f32 %v769_v2 }
 0x3fa   :  { %3355 = vrcp.f32 %v673_v4 }
 0x402   :  { %v3354_v35 = vpop.eup %3353 }
 0x403   :  { %v772_v5 = vmul.f32 2.0, %v3354_v35  ;;  %v774_v14 = vmul.f32 %v3354_v35, %v3587_v58 }
 0x404   :  { %v3356_v6 = vpop.eup %3355 }
 0x405   :  { %v2702_v7 = vadd.f32 -1.0, %v772_v5  ;;  %v676_v8 = vmul.f32 2.0, %v3356_v6  ;;  %v678_v17 = vmul.f32 0.0, %v3356_v6 }
 0x407   :  { %776 = vrot.lane.b32.xlu1 %v2702_v7, %s3489_s23  ;;  %v2699_v9 = vadd.f32 -1.0, %v676_v8 }
 0x409   :  { %680 = vrot.lane.b32.xlu0 %v2699_v9, %s3489_s23 }
 0x479   :  { %v777_v10 = vpop.permute.xlu1 %776 }
 0x47a   :  { %v779_v11 = vmul.f32 %v3354_v35, %v777_v10 }
 0x47b   :  { %v681_v12 = vpop.permute.xlu0 %680 }
 0x47c   :  { %v683_v13 = vmul.f32 %v3356_v6, %v681_v12  ;;  %781 = vrot.lane.b32.xlu1 %v779_v11, %s3496_s0 }
 0x47e   :  { %685 = vrot.lane.b32.xlu0 %v683_v13, %s3496_s0 }
 0x4ee   :  { %v782_v15 = vpop.permute.xlu1 %781 }
 0x4ef   :  { %v3657_v16 = vadd.f32 %v782_v15, %v774_v14 }
 0x4f0   :  { %v686_v18 = vpop.permute.xlu0 %685 }
 0x4f1   :  { %3357 = vtanh.f32 %v3657_v16  ;;  %v3660_v19 = vadd.f32 %v686_v18, %v678_v17 }
 0x4f3   :  { %3359 = vtanh.f32 %v3660_v19 }
 0x4fb   :  { %v3358_v22 = vpop.eup %3357 }
 0x4fc   :  { %787 = vrot.lane.b32.xlu1 %v3358_v22, %s3489_s23 }
 0x4fd   :  { %v3360_v23 = vpop.eup %3359 }
 0x4fe   :  { %691 = vrot.lane.b32.xlu0 %v3360_v23, %s3489_s23 }
 0x56e   :  { %v788_v24 = vpop.permute.xlu1 %787 }
 0x56f   :  { %v790_v25 = vmul.f32 %v3354_v35, %v788_v24  ;;  %v94_v24 = vsub.s32 3, %v3570_v36 }
 0x570   :  { %v692_v58 = vpop.permute.xlu0 %691 }
 0x571   :  { %v694_v27 = vmul.f32 %v3356_v6, %v692_v58  ;;  %867 = vrot.lane.b32.xlu1 %v790_v25, %s3496_s0 }
 0x573   :  { %792 = vrot.lane.b32.xlu0 %v694_v27, %s3496_s0  ;;  %v95_v27 = vrot.slane %v3572_v39, %v94_v24 }
 0x5e3   :  { %v868_v30 = vpop.permute.xlu1 %867 }
 0x5e4   :  { %2940 = vmatmul.mubr.msk.f32.vlgmr.msra.gmra.mrb[8].mxu1 %vm120_vm0, %v868_v30 }
 0x5e5   :  { %v793_v31 = vpop.permute.xlu0 %792  ;;  %3227 = vmatpush3.bf16.msra.mxu1 %v3602_v33  ;;  %2961 = vmatprep.mubr.msk.f32.mxu1 %vm3495_vm1, %v3493_v0 }
 0x5e6   :  { %2929 = vmatmul.mubr.msk.f32.vlgmr.msra.gmra.mrb[8].mxu0 %vm120_vm0, %v793_v31  ;;  %3228 = vmatprep.subr.bf16.mxu1 %v3494_v29  ;;  %v264_v31 = vadd.f32 %v3626_v44, %v95_v27 }
 0x5e7   :  { %3221 = vmatpush3.bf16.msra.mxu0 %v3552_v28  ;;  %2950 = vmatprep.mubr.msk.f32.mxu0 %vm3495_vm1, %v3493_v0 }
 0x5e8   :  { %3222 = vmatprep.subr.bf16.mxu0 %v3494_v29 }
 0x5e9   :  { %3230 = vmatpush3.bf16.msra.mxu1 %v3608_v38 }
 0x5ea   :  { %3237 = vmatprep.subr.bf16.mxu1 %v3494_v29 }
 0x5eb   :  { %3224 = vmatpush3.bf16.msra.mxu0 %v3558_v32 }
 0x5ec   :  { %3231 = vmatprep.subr.bf16.mxu0 %v3494_v29 }
 0x5ee   :  { %2951 = vmatmul.mubr.msk.f32.vlgmr.msra.gmra.mrb[10].mxu0 %vm120_vm0, %v868_v30 }
 0x5ef   :  { %3233 = vmatpush3.bf16.msra.mxu0 %v3590_v21  ;;  %2972 = vmatprep.mubr.msk.f32.mxu0 %vm3495_vm1, %v3493_v0 }
 0x5f0   :  { %3234 = vmatprep.subr.bf16.mxu0 %v3494_v29 }
 0x5f3   :  { %3236 = vmatpush3.bf16.msra.mxu0 %v3593_v26 }
 0x5f4   :  { %3243 = vmatprep.subr.bf16.mxu0 %v3494_v29 }
 0x6b7   :  { %v937_v34 = vpop.f32.mrb[8].mxu1 }
 0x6b8   :  { %v2941_v20 = vpop.f32.mrb[9].mxu1 }
 0x6b9   :  { %v862_v40 = vpop.f32.mrb[8].mxu0 }
 0x6ba   :  { %v938_v47 = vadd.f32 %v937_v34, %v862_v40  ;;  %v2930_v48 = vpop.f32.mrb[9].mxu0 }
 0x6bc   :  { %v941_v50 = vadd.f32 %v3649_v53, %v938_v47 }
 0x6be   :  { %v2705_v51 = vmul.f32 -1.442695, %v941_v50 }
 0x6c0   :  { %3361 = vpow2.f32 %v2705_v51 }
 0x6c1   :  { %v1033_v54 = vpop.f32.mrb[10].mxu0 }
 0x6c2   :  { %v1037_v55 = vadd.f32 %v1033_v54, %v262_v52  ;;  %v2952_v56 = vpop.f32.mrb[11].mxu0 }
 0x6c4   :  { %v2708_v57 = vmul.f32 -1.442695, %v1037_v55 }
 0x6c6   :  { %3363 = vpow2.f32 %v2708_v57 }
 0x6ca   :  { %v3362_v59 = vpop.eup %3361 }
 0x6cb   :  { %v945_v60 = vadd.f32 1.0, %v3362_v59 }
 0x6cd   :  { %3365 = vrcp.f32 %v945_v60 }
 0x6d0   :  { %v3364_v61 = vpop.eup %3363 }
 0x6d1   :  { %v1041_v62 = vadd.f32 1.0, %v3364_v61 }
 0x6d3   :  { %3367 = vrcp.f32 %v1041_v62 }
 0x6d7   :  { %v3366_v63 = vpop.eup %3365 }
 0x6d8   :  { %v948_v1 = vmul.f32 2.0, %v3366_v63  ;;  %v950_v8 = vmul.f32 %v3366_v63, %v3660_v19 }
 0x6da   :  { %v2706_v2 = vadd.f32 -1.0, %v948_v1 }
 0x6dc   :  { %952 = vrot.lane.b32.xlu0 %v2706_v2, %s3489_s23 }
 0x6dd   :  { %v3368_v3 = vpop.eup %3367 }
 0x6de   :  { %v1044_v4 = vmul.f32 2.0, %v3368_v3  ;;  %v1046_v11 = vmul.f32 %v3368_v3, %v3657_v16 }
 0x6e0   :  { %v2709_v43 = vadd.f32 -1.0, %v1044_v4 }
 0x6e2   :  { %1048 = vrot.lane.b32.xlu1 %v2709_v43, %s3489_s23 }
 0x74e   :  { %v953_v35 = vpop.permute.xlu0 %952 }
 0x74f   :  { %v955_v5 = vmul.f32 %v3366_v63, %v953_v35 }
 0x751   :  { %957 = vrot.lane.b32.xlu0 %v955_v5, %s3496_s0 }
 0x754   :  { %v1049_v6 = vpop.permute.xlu1 %1048 }
 0x755   :  { %v1051_v7 = vmul.f32 %v3368_v3, %v1049_v6 }
 0x757   :  { %1053 = vrot.lane.b32.xlu1 %v1051_v7, %s3496_s0 }
 0x7c3   :  { %v958_v9 = vpop.permute.xlu0 %957 }
 0x7c4   :  { %v3697_v10 = vadd.f32 %v958_v9, %v950_v8 }
 0x7c6   :  { %3369 = vtanh.f32 %v3697_v10 }
 0x7c9   :  { %v1054_v12 = vpop.permute.xlu1 %1053 }
 0x7ca   :  { %v3701_v13 = vadd.f32 %v1054_v12, %v1046_v11 }
 0x7cc   :  { %3371 = vtanh.f32 %v3701_v13 }
 0x7d0   :  { %v3370_v14 = vpop.eup %3369 }
 0x7d1   :  { %963 = vrot.lane.b32.xlu0 %v3370_v14, %s3489_s23 }
 0x7d6   :  { %v3372_v15 = vpop.eup %3371 }
 0x7d7   :  { %1059 = vrot.lane.b32.xlu1 %v3372_v15, %s3489_s23  ;;  %v98_v15 = vsub.s32 4, %v3570_v36 }
 0x843   :  { %v964_v17 = vpop.permute.xlu0 %963 }
 0x844   :  { %v966_v18 = vmul.f32 %v3366_v63, %v964_v17 }
 0x846   :  { %1064 = vrot.lane.b32.xlu0 %v966_v18, %s3496_s0 }
 0x849   :  { %v1060_v19 = vpop.permute.xlu1 %1059 }
 0x84a   :  { %v1062_v22 = vmul.f32 %v3368_v3, %v1060_v19 }
 0x84c   :  { %1139 = vrot.lane.b32.xlu1 %v1062_v22, %s3496_s0 }
 0x8b8   :  { %v1065_v16 = vpop.permute.xlu0 %1064 }
 0x8b9   :  { %2962 = vmatmul.mubr.msk.f32.vlgmr.msra.gmra.mrb[10].mxu1 %vm120_vm0, %v1065_v16 }
 0x8ba   :  { %3239 = vmatpush3.bf16.msra.mxu1 %v3552_v28  ;;  %2983 = vmatprep.mubr.msk.f32.mxu1 %vm3495_vm1, %v3493_v0 }
 0x8bb   :  { %3240 = vmatprep.subr.bf16.mxu1 %v3494_v29 }
 0x8be   :  { %3242 = vmatpush3.bf16.msra.mxu1 %v3558_v32  ;;  %v1140_v23 = vpop.permute.xlu1 %1139 }
 0x8bf   :  { %2973 = vmatmul.mubr.msk.f32.vlgmr.msra.gmra.mrb[12].mxu0 %vm120_vm0, %v1140_v23  ;;  %3249 = vmatprep.subr.bf16.mxu1 %v3494_v29 }
 0x8c0   :  { %3245 = vmatpush3.bf16.msra.mxu0 %v3602_v33  ;;  %2994 = vmatprep.mubr.msk.f32.mxu0 %vm3495_vm1, %v3493_v0 }
 0x8c1   :  { %2984 = vmatmul.mubr.msk.f32.vlgmr.msra.gmra.mrb[12].mxu1 %vm120_vm0, %v1140_v23  ;;  %3246 = vmatprep.subr.bf16.mxu0 %v3494_v29  ;;  %v99_v23 = vrot.slane %v3572_v39, %v98_v15 }
 0x8c2   :  { %3251 = vmatpush3.bf16.msra.mxu1 %v3590_v21  ;;  %3005 = vmatprep.mubr.msk.f32.mxu1 %vm3495_vm1, %v3493_v0 }
 0x8c3   :  { %3252 = vmatprep.subr.bf16.mxu1 %v3494_v29 }
 0x8c4   :  { %3248 = vmatpush3.bf16.msra.mxu0 %v3608_v38 }
 0x8c5   :  { %3255 = vmatprep.subr.bf16.mxu0 %v3494_v29 }
 0x8c6   :  { %3254 = vmatpush3.bf16.msra.mxu1 %v3593_v26 }
 0x8c7   :  { %3261 = vmatprep.subr.bf16.mxu1 %v3494_v29 }
 0x98c   :  { %v1134_v25 = vpop.f32.mrb[10].mxu1 }
 0x98d   :  { %v2963_v58 = vpop.f32.mrb[11].mxu1 }
 0x98e   :  { %v333_v58 = vadd.f32 %v3575_v41, %v99_v23 }
 0x992   :  { %v1209_v30 = vpop.f32.mrb[12].mxu0 }
 0x993   :  { %v1210_v34 = vadd.f32 %v1209_v30, %v1134_v25  ;;  %v2974_v37 = vpop.f32.mrb[13].mxu0 }
 0x994   :  { %v1305_v20 = vpop.f32.mrb[12].mxu1 }
 0x995   :  { %v1213_v40 = vadd.f32 %v3649_v53, %v1210_v34  ;;  %v1309_v47 = vadd.f32 %v1305_v20, %v264_v31  ;;  %v2985_v48 = vpop.f32.mrb[13].mxu1 }
 0x997   :  { %v2712_v49 = vmul.f32 -1.442695, %v1213_v40  ;;  %v2715_v50 = vmul.f32 -1.442695, %v1309_v47 }
 0x999   :  { %3373 = vpow2.f32 %v2712_v49 }
 0x99a   :  { %3375 = vpow2.f32 %v2715_v50 }
 0x9a3   :  { %v3374_v51 = vpop.eup %3373 }
 0x9a4   :  { %v3376_v52 = vpop.eup %3375  ;;  %v1217_v54 = vadd.f32 1.0, %v3374_v51 }
 0x9a5   :  { %v1313_v55 = vadd.f32 1.0, %v3376_v52 }
 0x9a6   :  { %3377 = vrcp.f32 %v1217_v54 }
 0x9a7   :  { %3379 = vrcp.f32 %v1313_v55 }
 0x9b0   :  { %v3378_v56 = vpop.eup %3377 }
 0x9b1   :  { %v3380_v57 = vpop.eup %3379  ;;  %v1220_v44 = vmul.f32 2.0, %v3378_v56  ;;  %v1222_v3 = vmul.f32 %v3378_v56, %v3697_v10 }
 0x9b2   :  { %v1316_v59 = vmul.f32 2.0, %v3380_v57  ;;  %v1318_v4 = vmul.f32 %v3380_v57, %v3701_v13 }
 0x9b3   :  { %v2713_v60 = vadd.f32 -1.0, %v1220_v44 }
 0x9b4   :  { %v2716_v61 = vadd.f32 -1.0, %v1316_v59 }
 0x9b5   :  { %1224 = vrot.lane.b32.xlu0 %v2713_v60, %s3489_s23 }
 0x9b6   :  { %1320 = vrot.lane.b32.xlu1 %v2716_v61, %s3489_s23 }
 0xa27   :  { %v1225_v62 = vpop.permute.xlu0 %1224 }
 0xa28   :  { %v1321_v63 = vpop.permute.xlu1 %1320  ;;  %v1227_v1 = vmul.f32 %v3378_v56, %v1225_v62 }
 0xa29   :  { %v1323_v2 = vmul.f32 %v3380_v57, %v1321_v63 }
 0xa2a   :  { %1229 = vrot.lane.b32.xlu0 %v1227_v1, %s3496_s0 }
 0xa2b   :  { %1325 = vrot.lane.b32.xlu1 %v1323_v2, %s3496_s0 }
 0xa9c   :  { %v1230_v43 = vpop.permute.xlu0 %1229 }
 0xa9d   :  { %v1326_v35 = vpop.permute.xlu1 %1325  ;;  %v3739_v5 = vadd.f32 %v1230_v43, %v1222_v3 }
 0xa9e   :  { %v3741_v6 = vadd.f32 %v1326_v35, %v1318_v4 }
 0xa9f   :  { %3381 = vtanh.f32 %v3739_v5 }
 0xaa0   :  { %3383 = vtanh.f32 %v3741_v6 }
 0xaa9   :  { %v3382_v7 = vpop.eup %3381 }
 0xaaa   :  { %v3384_v8 = vpop.eup %3383  ;;  %1235 = vrot.lane.b32.xlu0 %v3382_v7, %s3489_s23  ;;  %v102_v7 = vsub.s32 5, %v3570_v36 }
 0xaab   :  { %1331 = vrot.lane.b32.xlu1 %v3384_v8, %s3489_s23 }
 0xb1c   :  { %v1236_v9 = vpop.permute.xlu0 %1235 }
 0xb1d   :  { %v1332_v10 = vpop.permute.xlu1 %1331  ;;  %v1238_v11 = vmul.f32 %v3378_v56, %v1236_v9 }
 0xb1e   :  { %v1334_v12 = vmul.f32 %v3380_v57, %v1332_v10  ;;  %v103_v10 = vrot.slane %v3572_v39, %v102_v7 }
 0xb1f   :  { %1336 = vrot.lane.b32.xlu0 %v1238_v11, %s3496_s0 }
 0xb20   :  { %1411 = vrot.lane.b32.xlu1 %v1334_v12, %s3496_s0 }
 0xb91   :  { %v1337_v13 = vpop.permute.xlu0 %1336 }
 0xb92   :  { %v1412_v14 = vpop.permute.xlu1 %1411  ;;  %2995 = vmatmul.mubr.msk.f32.vlgmr.msra.gmra.mrb[14].mxu0 %vm120_vm0, %v1337_v13 }
 0xb93   :  { %3006 = vmatmul.mubr.msk.f32.vlgmr.msra.gmra.mrb[14].mxu1 %vm120_vm0, %v1412_v14  ;;  %3257 = vmatpush3.bf16.msra.mxu0 %v3552_v28 }
 0xb94   :  { %3258 = vmatprep.subr.bf16.mxu0 %v3494_v29  ;;  %3016 = vmatprep.mubr.msk.f32.mxu0 %vm3495_vm1, %v3493_v0 }
 0xb95   :  { %3263 = vmatpush3.bf16.msra.mxu1 %v3602_v33  ;;  %3027 = vmatprep.mubr.msk.f32.mxu1 %vm3495_vm1, %v3493_v0 }
 0xb96   :  { %3264 = vmatprep.subr.bf16.mxu1 %v3494_v29 }
 0xb97   :  { %3260 = vmatpush3.bf16.msra.mxu0 %v3558_v32 }
 0xb98   :  { %3267 = vmatprep.subr.bf16.mxu0 %v3494_v29 }
 0xb99   :  { %3266 = vmatpush3.bf16.msra.mxu1 %v3608_v38 }
 0xb9a   :  { %3017 = vmatmul.mubr.msk.f32.vlgmr.msra.gmra.mrb[16].mxu0 %vm120_vm0, %v1412_v14  ;;  %3273 = vmatprep.subr.bf16.mxu1 %v3494_v29  ;;  %v335_v14 = vadd.f32 %v3577_v42, %v103_v10 }
 0xb9b   :  { %3269 = vmatpush3.bf16.msra.mxu0 %v3590_v21  ;;  %3038 = vmatprep.mubr.msk.f32.mxu0 %vm3495_vm1, %v3493_v0 }
 0xb9c   :  { %3270 = vmatprep.subr.bf16.mxu0 %v3494_v29 }
 0xb9f   :  { %3272 = vmatpush3.bf16.msra.mxu0 %v3593_v26 }
 0xba0   :  { %3279 = vmatprep.subr.bf16.mxu0 %v3494_v29 }
 0xc65   :  { %v1406_v17 = vpop.f32.mrb[14].mxu0 }
 0xc66   :  { %v1481_v18 = vpop.f32.mrb[14].mxu1  ;;  %v2996_v19 = vpop.f32.mrb[15].mxu0 }
 0xc67   :  { %v1482_v22 = vadd.f32 %v1481_v18, %v1406_v17  ;;  %v3007_v16 = vpop.f32.mrb[15].mxu1 }
 0xc69   :  { %v1485_v24 = vadd.f32 %v3649_v53, %v1482_v22 }
 0xc6b   :  { %v2719_v25 = vmul.f32 -1.442695, %v1485_v24 }
 0xc6d   :  { %3385 = vpow2.f32 %v2719_v25  ;;  %v1577_v27 = vpop.f32.mrb[16].mxu0 }
 0xc6e   :  { %v1581_v30 = vadd.f32 %v1577_v27, %v333_v58  ;;  %v3018_v31 = vpop.f32.mrb[17].mxu0 }
 0xc70   :  { %v2722_v34 = vmul.f32 -1.442695, %v1581_v30 }
 0xc72   :  { %3387 = vpow2.f32 %v2722_v34 }
 0xc77   :  { %v3386_v37 = vpop.eup %3385 }
 0xc78   :  { %v1489_v20 = vadd.f32 1.0, %v3386_v37 }
 0xc7a   :  { %3389 = vrcp.f32 %v1489_v20 }
 0xc7c   :  { %v3388_v40 = vpop.eup %3387 }
 0xc7d   :  { %v1585_v47 = vadd.f32 1.0, %v3388_v40 }
 0xc7f   :  { %3391 = vrcp.f32 %v1585_v47 }
 0xc84   :  { %v3390_v48 = vpop.eup %3389 }
 0xc85   :  { %v1492_v49 = vmul.f32 2.0, %v3390_v48  ;;  %v1494_v44 = vmul.f32 %v3390_v48, %v3739_v5 }
 0xc87   :  { %v2720_v50 = vadd.f32 -1.0, %v1492_v49 }
 0xc89   :  { %v3392_v51 = vpop.eup %3391  ;;  %1496 = vrot.lane.b32.xlu0 %v2720_v50, %s3489_s23 }
 0xc8a   :  { %v1588_v52 = vmul.f32 2.0, %v3392_v51  ;;  %v1590_v61 = vmul.f32 %v3392_v51, %v3741_v6 }
 0xc8c   :  { %v2723_v41 = vadd.f32 -1.0, %v1588_v52 }
 0xc8e   :  { %1592 = vrot.lane.b32.xlu1 %v2723_v41, %s3489_s23 }
 0xcfb   :  { %v1497_v54 = vpop.permute.xlu0 %1496 }
 0xcfc   :  { %v1499_v55 = vmul.f32 %v3390_v48, %v1497_v54 }
 0xcfe   :  { %1501 = vrot.lane.b32.xlu0 %v1499_v55, %s3496_s0 }
 0xd00   :  { %v1593_v56 = vpop.permute.xlu1 %1592 }
 0xd01   :  { %v1595_v57 = vmul.f32 %v3392_v51, %v1593_v56 }
 0xd03   :  { %1597 = vrot.lane.b32.xlu1 %v1595_v57, %s3496_s0 }
 0xd70   :  { %v1502_v59 = vpop.permute.xlu0 %1501 }
 0xd71   :  { %v3779_v60 = vadd.f32 %v1502_v59, %v1494_v44 }
 0xd73   :  { %3393 = vtanh.f32 %v3779_v60 }
 0xd75   :  { %v1598_v62 = vpop.permute.xlu1 %1597 }
 0xd76   :  { %v3783_v63 = vadd.f32 %v1598_v62, %v1590_v61 }
 0xd78   :  { %3395 = vtanh.f32 %v3783_v63 }
 0xd7d   :  { %v3394_v1 = vpop.eup %3393 }
 0xd7e   :  { %1507 = vrot.lane.b32.xlu0 %v3394_v1, %s3489_s23 }
 0xd82   :  { %v3396_v2 = vpop.eup %3395 }
 0xd83   :  { %1603 = vrot.lane.b32.xlu1 %v3396_v2, %s3489_s23 }
 0xdf0   :  { %v1508_v3 = vpop.permute.xlu0 %1507 }
 0xdf1   :  { %v1510_v4 = vmul.f32 %v3390_v48, %v1508_v3 }
 0xdf3   :  { %1608 = vrot.lane.b32.xlu0 %v1510_v4, %s3496_s0 }
 0xdf5   :  { %v1604_v43 = vpop.permute.xlu1 %1603 }
 0xdf6   :  { %v1606_v35 = vmul.f32 %v3392_v51, %v1604_v43 }
 0xdf8   :  { %1683 = vrot.lane.b32.xlu1 %v1606_v35, %s3496_s0 }
 0xe65   :  { %v1609_v5 = vpop.permute.xlu0 %1608 }
 0xe66   :  { %3028 = vmatmul.mubr.msk.f32.vlgmr.msra.gmra.mrb[16].mxu1 %vm120_vm0, %v1609_v5 }
 0xe67   :  { %3275 = vmatpush3.bf16.msra.mxu1 %v3552_v28  ;;  %3049 = vmatprep.mubr.msk.f32.mxu1 %vm3495_vm1, %v3493_v0 }
 0xe68   :  { %3276 = vmatprep.subr.bf16.mxu1 %v3494_v29 }
 0xe6a   :  { %v1684_v6 = vpop.permute.xlu1 %1683 }
 0xe6b   :  { %3278 = vmatpush3.bf16.msra.mxu1 %v3558_v32  ;;  %3039 = vmatmul.mubr.msk.f32.vlgmr.msra.gmra.mrb[18].mxu0 %vm120_vm0, %v1684_v6 }
 0xe6c   :  { %3281 = vmatpush3.bf16.msra.mxu0 %v3602_v33  ;;  %3285 = vmatprep.subr.bf16.mxu1 %v3494_v29 }
 0xe6d   :  { %3282 = vmatprep.subr.bf16.mxu0 %v3494_v29  ;;  %3060 = vmatprep.mubr.msk.f32.mxu0 %vm3495_vm1, %v3493_v0 }
 0xe6e   :  { %3050 = vmatmul.mubr.msk.f32.vlgmr.msra.gmra.mrb[18].mxu1 %vm120_vm0, %v1684_v6 }
 0xe6f   :  { %3287 = vmatpush3.bf16.msra.mxu1 %v3590_v21  ;;  %3071 = vmatprep.mubr.msk.f32.mxu1 %vm3495_vm1, %v3493_v0 }
 0xe70   :  { %3284 = vmatpush3.bf16.msra.mxu0 %v3608_v38  ;;  %3288 = vmatprep.subr.bf16.mxu1 %v3494_v29 }
 0xe71   :  { %3291 = vmatprep.subr.bf16.mxu0 %v3494_v29 }
 0xe73   :  { %3290 = vmatpush3.bf16.msra.mxu1 %v3593_v26 }
 0xe74   :  { %3297 = vmatprep.subr.bf16.mxu1 %v3494_v29 }
 0xf39   :  { %v1678_v8 = vpop.f32.mrb[16].mxu1 }
 0xf3a   :  { %v3029_v9 = vpop.f32.mrb[17].mxu1 }
 0xf3e   :  { %v1753_v11 = vpop.f32.mrb[18].mxu0 }
 0xf3f   :  { %v1754_v12 = vadd.f32 %v1753_v11, %v1678_v8  ;;  %v3040_v13 = vpop.f32.mrb[19].mxu0 }
 0xf41   :  { %v1757_v15 = vadd.f32 %v3649_v53, %v1754_v12  ;;  %v1849_v17 = vpop.f32.mrb[18].mxu1 }
 0xf42   :  { %v1853_v18 = vadd.f32 %v1849_v17, %v335_v14  ;;  %v3051_v19 = vpop.f32.mrb[19].mxu1 }
 0xf43   :  { %v2726_v22 = vmul.f32 -1.442695, %v1757_v15 }
 0xf44   :  { %v2729_v16 = vmul.f32 -1.442695, %v1853_v18 }
 0xf45   :  { %3397 = vpow2.f32 %v2726_v22 }
 0xf46   :  { %3399 = vpow2.f32 %v2729_v16 }
 0xf4f   :  { %v3398_v23 = vpop.eup %3397 }
 0xf50   :  { %v3400_v24 = vpop.eup %3399  ;;  %v1761_v25 = vadd.f32 1.0, %v3398_v23 }
 0xf51   :  { %v1857_v58 = vadd.f32 1.0, %v3400_v24 }
 0xf52   :  { %3401 = vrcp.f32 %v1761_v25 }
 0xf53   :  { %3403 = vrcp.f32 %v1857_v58 }
 0xf5c   :  { %v3402_v27 = vpop.eup %3401 }
 0xf5d   :  { %v3404_v30 = vpop.eup %3403  ;;  %v1764_v31 = vmul.f32 2.0, %v3402_v27  ;;  %v1766_v49 = vmul.f32 %v3402_v27, %v3779_v60 }
 0xf5e   :  { %v1860_v34 = vmul.f32 2.0, %v3404_v30  ;;  %v1862_v50 = vmul.f32 %v3404_v30, %v3783_v63  ;;  %v106_v63 = vsub.s32 6, %v3570_v36 }
 0xf5f   :  { %v2727_v42 = vadd.f32 -1.0, %v1764_v31 }
 0xf60   :  { %v2730_v37 = vadd.f32 -1.0, %v1860_v34  ;;  %v107_v35 = vrot.slane %v3572_v39, %v106_v63 }
 0xf61   :  { %1768 = vrot.lane.b32.xlu0 %v2727_v42, %s3489_s23 }
 0xf62   :  { %1864 = vrot.lane.b32.xlu1 %v2730_v37, %s3489_s23  ;;  %v404_v7 = vadd.f32 %v3628_v45, %v107_v35 }
 0xfd3   :  { %v1769_v20 = vpop.permute.xlu0 %1768 }
 0xfd4   :  { %v1865_v40 = vpop.permute.xlu1 %1864  ;;  %v1771_v47 = vmul.f32 %v3402_v27, %v1769_v20 }
 0xfd5   :  { %v1867_v48 = vmul.f32 %v3404_v30, %v1865_v40 }
 0xfd6   :  { %1773 = vrot.lane.b32.xlu0 %v1771_v47, %s3496_s0 }
 0xfd7   :  { %1869 = vrot.lane.b32.xlu1 %v1867_v48, %s3496_s0 }
0x1048   :  { %v1774_v51 = vpop.permute.xlu0 %1773 }
0x1049   :  { %v1870_v52 = vpop.permute.xlu1 %1869  ;;  %v3821_v41 = vadd.f32 %v1774_v51, %v1766_v49 }
0x104a   :  { %v3823_v54 = vadd.f32 %v1870_v52, %v1862_v50 }
0x104b   :  { %3405 = vtanh.f32 %v3821_v41 }
0x104c   :  { %3407 = vtanh.f32 %v3823_v54 }
0x1055   :  { %v3406_v55 = vpop.eup %3405 }
0x1056   :  { %v3408_v56 = vpop.eup %3407  ;;  %1779 = vrot.lane.b32.xlu0 %v3406_v55, %s3489_s23 }
0x1057   :  { %1875 = vrot.lane.b32.xlu1 %v3408_v56, %s3489_s23 }
0x10c8   :  { %v1780_v57 = vpop.permute.xlu0 %1779 }
0x10c9   :  { %v1876_v44 = vpop.permute.xlu1 %1875  ;;  %v1782_v59 = vmul.f32 %v3402_v27, %v1780_v57 }
0x10ca   :  { %v1878_v60 = vmul.f32 %v3404_v30, %v1876_v44 }
0x10cb   :  { %1880 = vrot.lane.b32.xlu0 %v1782_v59, %s3496_s0 }
0x10cc   :  { %1955 = vrot.lane.b32.xlu1 %v1878_v60, %s3496_s0 }
0x113d   :  { %v1881_v61 = vpop.permute.xlu0 %1880 }
0x113e   :  { %v1956_v62 = vpop.permute.xlu1 %1955  ;;  %3061 = vmatmul.mubr.msk.f32.vlgmr.msra.gmra.mrb[20].mxu0 %vm120_vm0, %v1881_v61 }
0x113f   :  { %3072 = vmatmul.mubr.msk.f32.vlgmr.msra.gmra.mrb[20].mxu1 %vm120_vm0, %v1956_v62  ;;  %3293 = vmatpush3.bf16.msra.mxu0 %v3552_v28 }
0x1140   :  { %3294 = vmatprep.subr.bf16.mxu0 %v3494_v29  ;;  %3082 = vmatprep.mubr.msk.f32.mxu0 %vm3495_vm1, %v3493_v0 }
0x1141   :  { %3299 = vmatpush3.bf16.msra.mxu1 %v3602_v33  ;;  %3093 = vmatprep.mubr.msk.f32.mxu1 %vm3495_vm1, %v3493_v0 }
0x1142   :  { %3300 = vmatprep.subr.bf16.mxu1 %v3494_v29 }
0x1143   :  { %3296 = vmatpush3.bf16.msra.mxu0 %v3558_v32 }
0x1144   :  { %3303 = vmatprep.subr.bf16.mxu0 %v3494_v29 }
0x1145   :  { %3302 = vmatpush3.bf16.msra.mxu1 %v3608_v38 }
0x1146   :  { %3083 = vmatmul.mubr.msk.f32.vlgmr.msra.gmra.mrb[22].mxu0 %vm120_vm0, %v1956_v62  ;;  %3309 = vmatprep.subr.bf16.mxu1 %v3494_v29 }
0x1147   :  { %3305 = vmatpush3.bf16.msra.mxu0 %v3590_v21  ;;  %3104 = vmatprep.mubr.msk.f32.mxu0 %vm3495_vm1, %v3493_v0 }
0x1148   :  { %3306 = vmatprep.subr.bf16.mxu0 %v3494_v29 }
0x114b   :  { %3308 = vmatpush3.bf16.msra.mxu0 %v3593_v26 }
0x114c   :  { %3315 = vmatprep.subr.bf16.mxu0 %v3494_v29 }
0x1211   :  { %v1950_v1 = vpop.f32.mrb[20].mxu0 }
0x1212   :  { %v2025_v2 = vpop.f32.mrb[20].mxu1  ;;  %v3062_v3 = vpop.f32.mrb[21].mxu0 }
0x1213   :  { %v2026_v4 = vadd.f32 %v2025_v2, %v1950_v1  ;;  %v3073_v43 = vpop.f32.mrb[21].mxu1 }
0x1215   :  { %v2029_v5 = vadd.f32 %v3649_v53, %v2026_v4 }
0x1217   :  { %v2733_v6 = vmul.f32 -1.442695, %v2029_v5 }
0x1219   :  { %3409 = vpow2.f32 %v2733_v6  ;;  %v2121_v8 = vpop.f32.mrb[22].mxu0 }
0x121a   :  { %v2125_v9 = vadd.f32 %v2121_v8, %v404_v7  ;;  %v3084_v10 = vpop.f32.mrb[23].mxu0 }
0x121c   :  { %v2736_v11 = vmul.f32 -1.442695, %v2125_v9 }
0x121e   :  { %3411 = vpow2.f32 %v2736_v11 }
0x1223   :  { %v3410_v12 = vpop.eup %3409 }
0x1224   :  { %v2033_v13 = vadd.f32 1.0, %v3410_v12 }
0x1226   :  { %3413 = vrcp.f32 %v2033_v13 }
0x1228   :  { %v3412_v14 = vpop.eup %3411 }
0x1229   :  { %v2129_v15 = vadd.f32 1.0, %v3412_v14 }
0x122b   :  { %3415 = vrcp.f32 %v2129_v15 }
0x1230   :  { %v3414_v17 = vpop.eup %3413 }
0x1231   :  { %v2036_v18 = vmul.f32 2.0, %v3414_v17  ;;  %v2038_v27 = vmul.f32 %v3414_v17, %v3821_v41 }
0x1233   :  { %v2734_v19 = vadd.f32 -1.0, %v2036_v18 }
0x1235   :  { %v3416_v22 = vpop.eup %3415  ;;  %2040 = vrot.lane.b32.xlu0 %v2734_v19, %s3489_s23 }
0x1236   :  { %v2132_v16 = vmul.f32 2.0, %v3416_v22  ;;  %v2134_v34 = vmul.f32 %v3416_v22, %v3823_v54 }
0x1238   :  { %v2737_v45 = vadd.f32 -1.0, %v2132_v16 }
0x123a   :  { %2136 = vrot.lane.b32.xlu1 %v2737_v45, %s3489_s23 }
0x12a7   :  { %v2041_v23 = vpop.permute.xlu0 %2040 }
0x12a8   :  { %v2043_v24 = vmul.f32 %v3414_v17, %v2041_v23 }
0x12aa   :  { %2045 = vrot.lane.b32.xlu0 %v2043_v24, %s3496_s0 }
0x12ac   :  { %v2137_v25 = vpop.permute.xlu1 %2136 }
0x12ad   :  { %v2139_v58 = vmul.f32 %v3416_v22, %v2137_v25 }
0x12af   :  { %2141 = vrot.lane.b32.xlu1 %v2139_v58, %s3496_s0 }
0x131c   :  { %v2046_v30 = vpop.permute.xlu0 %2045 }
0x131d   :  { %v3861_v31 = vadd.f32 %v2046_v30, %v2038_v27 }
0x131f   :  { %3417 = vtanh.f32 %v3861_v31 }
0x1321   :  { %v2142_v42 = vpop.permute.xlu1 %2141 }
0x1322   :  { %v3865_v37 = vadd.f32 %v2142_v42, %v2134_v34 }
0x1324   :  { %3419 = vtanh.f32 %v3865_v37 }
0x1329   :  { %v3418_v20 = vpop.eup %3417 }
0x132a   :  { %2051 = vrot.lane.b32.xlu0 %v3418_v20, %s3489_s23 }
0x132e   :  { %v3420_v40 = vpop.eup %3419 }
0x132f   :  { %2147 = vrot.lane.b32.xlu1 %v3420_v40, %s3489_s23 }
0x139c   :  { %v2052_v47 = vpop.permute.xlu0 %2051 }
0x139d   :  { %v2054_v48 = vmul.f32 %v3414_v17, %v2052_v47 }
0x139f   :  { %2152 = vrot.lane.b32.xlu0 %v2054_v48, %s3496_s0 }
0x13a1   :  { %v2148_v49 = vpop.permute.xlu1 %2147 }
0x13a2   :  { %v2150_v50 = vmul.f32 %v3416_v22, %v2148_v49 }
0x13a4   :  { %2227 = vrot.lane.b32.xlu1 %v2150_v50, %s3496_s0  ;;  %v2599_v50 = vld [vmem:[#allocation4 + $0x68] sm:$0xff] }
0x1411   :  { %v2153_v51 = vpop.permute.xlu0 %2152 }
0x1412   :  { %3094 = vmatmul.mubr.msk.f32.vlgmr.msra.gmra.mrb[22].mxu1 %vm120_vm0, %v2153_v51  ;;  %v2601_v51 = vld [vmem:[#allocation4 + $0x78] sm:$0xff] }
0x1413   :  { %3311 = vmatpush3.bf16.msra.mxu1 %v3552_v28  ;;  %3115 = vmatprep.mubr.msk.f32.mxu1 %vm3495_vm1, %v3493_v0  ;;  %v110_v28 = vsub.s32 7, %v3570_v36 }
0x1414   :  { %3312 = vmatprep.subr.bf16.mxu1 %v3494_v29 }
0x1415   :  { %v111_v41 = vrot.slane %v3572_v39, %v110_v28  ;;  %v2602_v28 = vld [vmem:[#allocation4 + $0x80] sm:$0xff] }
0x1416   :  { %v2228_v52 = vpop.permute.xlu1 %2227 }
0x1417   :  { %3314 = vmatpush3.bf16.msra.mxu1 %v3558_v32  ;;  %3105 = vmatmul.mubr.msk.f32.vlgmr.msra.gmra.mrb[24].mxu0 %vm120_vm0, %v2228_v52  ;;  %v406_v56 = vadd.f32 %v3630_v46, %v111_v41 }
0x1418   :  { %3321 = vmatprep.subr.bf16.mxu1 %v3494_v29  ;;  %3317 = vmatpush3.bf16.msra.mxu0 %v3602_v33 }
0x1419   :  { %3318 = vmatprep.subr.bf16.mxu0 %v3494_v29  ;;  %3126 = vmatprep.mubr.msk.f32.mxu0 %vm3495_vm1, %v3493_v0 }
0x141a   :  { %3116 = vmatmul.mubr.msk.f32.vlgmr.msra.gmra.mrb[24].mxu1 %vm120_vm0, %v2228_v52 }
0x141b   :  { %3323 = vmatpush3.bf16.msra.mxu1 %v3590_v21  ;;  %3137 = vmatprep.mubr.msk.f32.mxu1 %vm3495_vm1, %v3493_v0 }
0x141c   :  { %3324 = vmatprep.subr.bf16.mxu1 %v3494_v29  ;;  %3320 = vmatpush3.bf16.msra.mxu0 %v3608_v38 }
0x141d   :  { %3327 = vmatprep.subr.bf16.mxu0 %v3494_v29 }
0x141f   :  { %3326 = vmatpush3.bf16.msra.mxu1 %v3593_v26 }
0x14e5   :  { %v2222_v32 = vpop.f32.mrb[22].mxu1 }
0x14e6   :  { %v3095_v33 = vpop.f32.mrb[23].mxu1 }
0x14ea   :  { %v2297_v54 = vpop.f32.mrb[24].mxu0 }
0x14eb   :  { %v2298_v55 = vadd.f32 %v2297_v54, %v2222_v32  ;;  %v3106_v21 = vpop.f32.mrb[25].mxu0  ;;  %v3331_v32 = vpack.c.bf16 %v2602_v28, %v2601_v51 }
0x14ec   :  { %v2749_v21 = vld [vmem:[#allocation4 + $0x88] ss:$0 sm:$0xff] }
0x14ed   :  { %v2301_v57 = vadd.f32 %v3649_v53, %v2298_v55  ;;  %v2393_v44 = vpop.f32.mrb[24].mxu1 }
0x14ee   :  { %v2397_v59 = vadd.f32 %v2393_v44, %v406_v56  ;;  %v3117_v38 = vpop.f32.mrb[25].mxu1 }
0x14ef   :  { %v2740_v60 = vmul.f32 -1.442695, %v2301_v57 }
0x14f0   :  { %v2743_v61 = vmul.f32 -1.442695, %v2397_v59 }
0x14f1   :  { %3421 = vpow2.f32 %v2740_v60 }
0x14f2   :  { %3423 = vpow2.f32 %v2743_v61 }
0x14fb   :  { %v3422_v26 = vpop.eup %3421 }
0x14fc   :  { %v3424_v36 = vpop.eup %3423  ;;  %v2305_v62 = vadd.f32 1.0, %v3422_v26 }
0x14fd   :  { %v2401_v63 = vadd.f32 1.0, %v3424_v36 }
0x14fe   :  { %3425 = vrcp.f32 %v2305_v62 }
0x14ff   :  { %3427 = vrcp.f32 %v2401_v63 }
0x1508   :  { %v3426_v39 = vpop.eup %3425 }
0x1509   :  { %v3428_v1 = vpop.eup %3427  ;;  %v2308_v2 = vmul.f32 2.0, %v3426_v39  ;;  %v2310_v7 = vmul.f32 %v3426_v39, %v3861_v31 }
0x150a   :  { %v2404_v3 = vmul.f32 2.0, %v3428_v1  ;;  %v2406_v8 = vmul.f32 %v3428_v1, %v3865_v37 }
0x150b   :  { %v2741_v46 = vadd.f32 -1.0, %v2308_v2 }
0x150c   :  { %v2744_v4 = vadd.f32 -1.0, %v2404_v3 }
0x150d   :  { %2312 = vrot.lane.b32.xlu0 %v2741_v46, %s3489_s23 }
0x150e   :  { %2408 = vrot.lane.b32.xlu1 %v2744_v4, %s3489_s23 }
0x157f   :  { %v2313_v43 = vpop.permute.xlu0 %2312 }
0x1580   :  { %v2409_v35 = vpop.permute.xlu1 %2408  ;;  %v2315_v5 = vmul.f32 %v3426_v39, %v2313_v43 }
0x1581   :  { %v2411_v6 = vmul.f32 %v3428_v1, %v2409_v35 }
0x1582   :  { %2317 = vrot.lane.b32.xlu0 %v2315_v5, %s3496_s0 }
0x1583   :  { %2413 = vrot.lane.b32.xlu1 %v2411_v6, %s3496_s0 }
0x15f4   :  { %v2318_v9 = vpop.permute.xlu0 %2317 }
0x15f5   :  { %v2414_v10 = vpop.permute.xlu1 %2413  ;;  %v2320_v11 = vadd.f32 %v2318_v9, %v2310_v7 }
0x15f6   :  { %v2416_v12 = vadd.f32 %v2414_v10, %v2406_v8 }
0x15f7   :  { %3429 = vtanh.f32 %v2320_v11 }
0x15f8   :  { %3431 = vtanh.f32 %v2416_v12 }
0x1601   :  { %v3430_v13 = vpop.eup %3429 }
0x1602   :  { %v3432_v14 = vpop.eup %3431  ;;  %2323 = vrot.lane.b32.xlu0 %v3430_v13, %s3489_s23 }
0x1603   :  { %2419 = vrot.lane.b32.xlu1 %v3432_v14, %s3489_s23 }
0x1674   :  { %v2324_v15 = vpop.permute.xlu0 %2323 }
0x1675   :  { %v2420_v17 = vpop.permute.xlu1 %2419  ;;  %v2326_v18 = vmul.f32 %v3426_v39, %v2324_v15 }
0x1676   :  { %v2422_v19 = vmul.f32 %v3428_v1, %v2420_v17 }
0x1677   :  { %2424 = vrot.lane.b32.xlu0 %v2326_v18, %s3496_s0 }
0x1678   :  { %2499 = vrot.lane.b32.xlu1 %v2422_v19, %s3496_s0 }
0x16e9   :  { %v2425_v22 = vpop.permute.xlu0 %2424 }
0x16ea   :  { %v2500_v16 = vpop.permute.xlu1 %2499  ;;  %3127 = vmatmul.mubr.msk.f32.vlgmr.msra.gmra.mrb[26].mxu0 %vm120_vm0, %v2425_v22 }
0x16eb   :  { %3138 = vmatmul.mubr.msk.f32.vlgmr.msra.gmra.mrb[26].mxu1 %vm120_vm0, %v2500_v16  ;;  %3148 = vmatprep.mubr.msk.f32.mxu0 %vm3495_vm1, %v3493_v0 }
0x17bd   :  { %v2494_v45 = vpop.f32.mrb[26].mxu0 }
0x17be   :  { %v2569_v23 = vpop.f32.mrb[26].mxu1  ;;  %v3128_v24 = vpop.f32.mrb[27].mxu0 }
0x17bf   :  { %v2570_v25 = vadd.f32 %v2569_v23, %v2494_v45  ;;  %v3139_v58 = vpop.f32.mrb[27].mxu1 }
0x17c1   :  { %v2573_v27 = vadd.f32 %v3649_v53, %v2570_v25  ;;  %v2600_v53 = vld [vmem:[#allocation4 + $0x70] sm:$0xff] }
0x17c2   :  { %v3328_v52 = vpack.c.bf16 %v2600_v53, %v2599_v50 }
0x17c3   :  { %v2747_v30 = vmul.f32 -1.442695, %v2573_v27 }
0x17c4   :  { %3329 = vmatpush3.bf16.msra.mxu0 %v3328_v52 }
0x17c5   :  { %3433 = vpow2.f32 %v2747_v30  ;;  %3330 = vmatprep.subr.bf16.mxu0 %v3494_v29 }
0x17c8   :  { %3332 = vmatpush3.bf16.msra.mxu0 %v3331_v32 }
0x17cf   :  { %v3434_v31 = vpop.eup %3433 }
0x17d0   :  { %v2577_v34 = vadd.f32 1.0, %v3434_v31 }
0x17d2   :  { %3435 = vrcp.f32 %v2577_v34 }
0x17dc   :  { %v3436_v42 = vpop.eup %3435 }
0x17dd   :  { %v2580_v37 = vmul.f32 2.0, %v3436_v42  ;;  %v2582_v0 = vmul.f32 %v3436_v42, %v2320_v11 }
0x17df   :  { %v2748_v20 = vadd.f32 -1.0, %v2580_v37 }
0x17e1   :  { %2584 = vrot.lane.b32.xlu0 %v2748_v20, %s3489_s23 }
0x1853   :  { %v2585_v40 = vpop.permute.xlu0 %2584 }
0x1854   :  { %v2587_v47 = vmul.f32 %v3436_v42, %v2585_v40 }
0x1856   :  { %2589 = vrot.lane.b32.xlu1 %v2587_v47, %s3496_s0 }
0x18c8   :  { %v2590_v48 = vpop.permute.xlu1 %2589 }
0x18c9   :  { %v2592_v49 = vadd.f32 %v2590_v48, %v2582_v0 }
0x18cb   :  { %3437 = vtanh.f32 %v2592_v49 }
0x18d5   :  { %v3438_v33 = vpop.eup %3437 }
0x18d6   :  { %2595 = vrot.lane.b32.xlu0 %v3438_v33, %s3489_s23 }
0x1948   :  { %v2596_v41 = vpop.permute.xlu0 %2595 }
0x1949   :  { %v2598_v54 = vmul.f32 %v3436_v42, %v2596_v41 }
0x194b   :  { %2609 = vrot.lane.b32.xlu1 %v2598_v54, %s3496_s0 }
0x19bd   :  { %v2610_v55 = vpop.permute.xlu1 %2609 }
0x19be   :  { %3149 = vmatmul.mubr.msk.f32.vlgmr.msra.gmra.mrb[28].mxu0 %vm120_vm0, %v2610_v55 }
0x1a91   :  { %v2679_v56 = vpop.f32.mrb[28].mxu0 }
0x1a92   :  { %v2680_v57 = vadd.f32 %v2749_v21, %v2679_v56  ;;  %v3150_v44 = vpop.f32.mrb[29].mxu0 }
0x1a94   :  { %2683 = vst [vmem:[%s3923_s3] sm:$0x3] %v2680_v57 }
0x1a95   :  { %2688 = vsyncpa [#allocation3], 1 }
0x1a96   :  { %2689 = vsyncpa [#allocation5], 1 }

</bundles_post_ra>
